<compile_context>
chip_gen: v7x
topology: tpu7x:2x2x1
jax: 0.10.0
libtpu: 0.0.40
codegen_flags: <defaults>
</compile_context>

<pallas_src>
import functools

import jax
import jax.numpy as jnp
from jax.experimental import pallas as pl
from jax.experimental.pallas import tpu as pltpu


NEG_INF = -1e30


def _layer_norm(x, g, b, eps=1e-5):
    mu = jnp.mean(x, axis=-1, keepdims=True)
    var = jnp.mean(jnp.square(x - mu), axis=-1, keepdims=True)
    return (x - mu) * jax.lax.rsqrt(var + eps) * g + b


# ---------------------------------------------------------------------------
# Fused kernel: all encoder layers + classification head
# ---------------------------------------------------------------------------

def fused_transformer_kernel(
    # inputs (order == in_specs / call operands)
    x_ref, kbias_ref,
    wqkv_ref, bqkv_ref, wo_ref, bo_ref, ln1g_ref, ln1b_ref,
    w1_ref, b1_ref, w2_ref, b2_ref, ln2g_ref, ln2b_ref,
    wfc_ref, bfc_ref,
    # output
    out_ref,
    # scratch
    act_ref,
    *, num_heads,
):
    li = pl.program_id(1)
    num_layers = pl.num_programs(1)

    # Layer 0 of each batch element: load embedded tokens into the
    # VMEM-resident activation scratch.
    @pl.when(li == 0)
    def _():
        act_ref[...] = x_ref[0]

    x = act_ref[...]                              # (S, E) f32
    S, E = x.shape
    H = num_heads
    dh = E // H
    scale = 1.0 / float(dh) ** 0.5

    # ---- per-layer weights (streamed per grid step) ----
    wqkv = wqkv_ref[0]                            # (3H, E, dh) bf16 (q|k|v)
    bqkv = bqkv_ref[0]                            # (3H, 1, dh) f32
    wo = wo_ref[0]                                # (H, dh, E)  bf16
    bo = bo_ref[0]                                # (1, E)      f32
    ln1g = ln1g_ref[0]
    ln1b = ln1b_ref[0]
    w1 = w1_ref[0]                                # (E, F) bf16
    b1 = b1_ref[0]                                # (1, F) f32
    w2 = w2_ref[0]                                # (F, E) bf16
    b2 = b2_ref[0]                                # (1, E) f32
    ln2g = ln2g_ref[0]
    ln2b = ln2b_ref[0]

    # ---- multi-head self attention (heads batched; no Python loops) ----
    x_bf = jnp.broadcast_to(x.astype(jnp.bfloat16)[None], (3 * H, S, E))

    # Single packed QKV projection: one batched dot over the (3H) slab.
    qkv = jnp.einsum('gse,ged->gsd', x_bf, wqkv,
                     preferred_element_type=jnp.float32) + bqkv    # (3H,S,dh)
    q = qkv[0:H] * scale                          # fold 1/sqrt(dh) into q
    k = qkv[H:2 * H]
    v = qkv[2 * H:3 * H]

    s = jnp.einsum('hqd,hkd->hqk', q.astype(jnp.bfloat16),
                   k.astype(jnp.bfloat16),
                   preferred_element_type=jnp.float32)             # (H,S,S)
    s = s + kbias_ref[0][None]                    # key-padding bias (1,1,S)

    m = jnp.max(s, axis=-1, keepdims=True)
    p = jnp.exp(s - m)
    p = p * pl.reciprocal(jnp.sum(p, axis=-1, keepdims=True), approx=True)

    ctx = jnp.einsum('hqk,hkd->hqd', p.astype(jnp.bfloat16),
                     v.astype(jnp.bfloat16),
                     preferred_element_type=jnp.float32)           # (H,S,dh)
    attn = jnp.einsum('hsd,hde->hse', ctx.astype(jnp.bfloat16), wo,
                      preferred_element_type=jnp.float32)          # (H,S,E)
    attn = jnp.sum(attn, axis=0) + bo                              # (S,E)

    # ---- post-norm residual blocks (f32 elementwise math) ----
    y1 = _layer_norm(x + attn, ln1g, ln1b)
    hid = jnp.dot(y1.astype(jnp.bfloat16), w1,
                  preferred_element_type=jnp.float32) + b1
    hid = jnp.maximum(hid, 0.0)
    ff = jnp.dot(hid.astype(jnp.bfloat16), w2,
                 preferred_element_type=jnp.float32) + b2
    y2 = _layer_norm(y1 + ff, ln2g, ln2b)

    act_ref[...] = y2

    # ---- classification head folded into the last layer step ----
    @pl.when(li == num_layers - 1)
    def _():
        pooled = jnp.mean(y2, axis=0, keepdims=True)               # (1, E)
        logits = jnp.dot(pooled.astype(jnp.bfloat16), wfc_ref[...],
                         preferred_element_type=jnp.float32) + bfc_ref[...]
        mx = jnp.max(logits, axis=-1, keepdims=True)
        z = logits - mx
        lse = jnp.log(jnp.sum(jnp.exp(z), axis=-1, keepdims=True))
        out_ref[0] = z - lse                                       # (1, Cpad)


# ---------------------------------------------------------------------------
# Wrapper
# ---------------------------------------------------------------------------

def conversation_model_forward(input_ids, attention_mask, params, *,
                               num_heads, num_classes):
    # Embedding gather stays in plain JAX (data-dependent gather = glue).
    x = params["embedding"][input_ids].astype(jnp.float32)         # (B, S, E)
    B, S, E = x.shape
    # src_key_padding_mask semantics: nonzero / True == PAD (ignored key).
    kbias = (attention_mask.astype(jnp.float32) * NEG_INF)[:, None, :]  # (B,1,S)

    L, G, _, dh = params["wqkv"].shape            # G = 3*H
    H = num_heads
    F = params["w1"].shape[-1]
    c_pad = params["fc_w"].shape[-1]

    batch_map = lambda bi, li: (bi, 0, 0)
    layer_map3 = lambda bi, li: (li, 0, 0)
    layer_map4 = lambda bi, li: (li, 0, 0, 0)
    const_map2 = lambda bi, li: (0, 0)

    in_specs = [
        pl.BlockSpec((1, S, E), batch_map),              # embedded tokens
        pl.BlockSpec((1, 1, S), batch_map),              # key-padding bias
        pl.BlockSpec((1, G, E, dh), layer_map4),         # wqkv packed slab
        pl.BlockSpec((1, G, 1, dh), layer_map4),         # bqkv
        pl.BlockSpec((1, H, dh, E), layer_map4),         # wo
        pl.BlockSpec((1, 1, E), layer_map3),             # bo
        pl.BlockSpec((1, 1, E), layer_map3),             # ln1 gamma
        pl.BlockSpec((1, 1, E), layer_map3),             # ln1 beta
        pl.BlockSpec((1, E, F), layer_map3),             # w1
        pl.BlockSpec((1, 1, F), layer_map3),             # b1
        pl.BlockSpec((1, F, E), layer_map3),             # w2
        pl.BlockSpec((1, 1, E), layer_map3),             # b2
        pl.BlockSpec((1, 1, E), layer_map3),             # ln2 gamma
        pl.BlockSpec((1, 1, E), layer_map3),             # ln2 beta
        pl.BlockSpec((E, c_pad), const_map2),            # fc weight (padded)
        pl.BlockSpec((1, c_pad), const_map2),            # fc bias (padded)
    ]
    out_specs = pl.BlockSpec((1, 1, c_pad), batch_map)

    kernel = functools.partial(fused_transformer_kernel, num_heads=num_heads)
    out = pl.pallas_call(
        kernel,
        out_shape=jax.ShapeDtypeStruct((B, 1, c_pad), jnp.float32),
        grid_spec=pltpu.PrefetchScalarGridSpec(
            num_scalar_prefetch=0,
            grid=(B, L),
            in_specs=in_specs,
            out_specs=out_specs,
            scratch_shapes=[pltpu.VMEM((S, E), jnp.float32)],
        ),
        compiler_params=pltpu.CompilerParams(
            dimension_semantics=("parallel", "arbitrary"),
            vmem_limit_bytes=32 * 1024 * 1024,
        ),
    )(
        x, kbias,
        params["wqkv"], params["bqkv"], params["wo"], params["bo"],
        params["ln1_g"], params["ln1_b"],
        params["w1"], params["b1"], params["w2"], params["b2"],
        params["ln2_g"], params["ln2_b"],
        params["fc_w"], params["fc_b"],
    )
    return out[:, 0, :num_classes]


# ---------------------------------------------------------------------------
# Pure-JAX reference (same params / math, f32 throughout) for validation
# ---------------------------------------------------------------------------

def reference_forward(input_ids, attention_mask, params, *, num_heads,
                      num_classes):
    x = params["embedding"][input_ids].astype(jnp.float32)
    B, S, E = x.shape
    H = num_heads
    dh = E // H
    L = params["wqkv"].shape[0]
    kbias = (attention_mask.astype(jnp.float32) * NEG_INF)[:, None, None, :]

    def ln(v, g, b, eps=1e-5):
        mu = v.mean(-1, keepdims=True)
        var = ((v - mu) ** 2).mean(-1, keepdims=True)
        return (v - mu) / jnp.sqrt(var + eps) * g + b

    for l in range(L):
        wqkv = params["wqkv"][l].astype(jnp.float32)
        bqkv = params["bqkv"][l]
        wo = params["wo"][l].astype(jnp.float32)
        bo = params["bo"][l]
        qkv = jnp.einsum('bse,ged->bgsd', x, wqkv) + bqkv[None]
        q, k, v = qkv[:, 0:H], qkv[:, H:2 * H], qkv[:, 2 * H:]
        s = jnp.einsum('bhqd,bhkd->bhqk', q, k) / jnp.sqrt(dh) + kbias
        p = jax.nn.softmax(s, axis=-1)
        ctx = jnp.einsum('bhqk,bhkd->bhqd', p, v)
        attn = jnp.einsum('bhqd,hde->bqe', ctx, wo) + bo[None]
        y1 = ln(x + attn, params["ln1_g"][l], params["ln1_b"][l])
        hid = jax.nn.relu(y1 @ params["w1"][l].astype(jnp.float32)
                          + params["b1"][l])
        ff = hid @ params["w2"][l].astype(jnp.float32) + params["b2"][l]
        x = ln(y1 + ff, params["ln2_g"][l], params["ln2_b"][l])

    pooled = x.mean(axis=1)
    logits = (pooled @ params["fc_w"].astype(jnp.float32)
              + params["fc_b"])[:, :num_classes]
    return jax.nn.log_softmax(logits, axis=-1)


# ---------------------------------------------------------------------------
# Deterministic parameter init (synthetic weights; no checkpoint load)
# ---------------------------------------------------------------------------

def init_params(key, vocab_size, embed_size, num_heads, hidden_dim,
                num_layers, num_classes):
    dh = embed_size // num_heads
    c_pad = ((num_classes + 127) // 128) * 128       # lane-dense head output
    k_emb, k_fc, k_layers = jax.random.split(key, 3)

    def nrm(k, shape):
        return jax.random.normal(k, shape, jnp.float32) * 0.02

    wqkv, wo, w1, w2 = [], [], [], []
    for lk in jax.random.split(k_layers, num_layers):
        k0, k1, k2, k3 = jax.random.split(lk, 4)
        # packed (3H, E, dh): rows 0..H-1 = Q heads, H..2H-1 = K, 2H..3H-1 = V
        wqkv.append(nrm(k0, (3 * num_heads, embed_size, dh)))
        wo.append(nrm(k1, (num_heads, dh, embed_size)))
        w1.append(nrm(k2, (embed_size, hidden_dim)))
        w2.append(nrm(k3, (hidden_dim, embed_size)))

    fc_w = jnp.zeros((embed_size, c_pad), jnp.float32)
    fc_w = fc_w.at[:, :num_classes].set(nrm(k_fc, (embed_size, num_classes)))
    fc_b = jnp.full((1, c_pad), NEG_INF, jnp.float32)   # mask padded classes
    fc_b = fc_b.at[:, :num_classes].set(0.0)

    return {
        "embedding": nrm(k_emb, (vocab_size, embed_size)),
        "wqkv": jnp.stack(wqkv).astype(jnp.bfloat16),
        "bqkv": jnp.zeros((num_layers, 3 * num_heads, 1, dh), jnp.float32),
        "wo": jnp.stack(wo).astype(jnp.bfloat16),
        "bo": jnp.zeros((num_layers, 1, embed_size), jnp.float32),
        "ln1_g": jnp.ones((num_layers, 1, embed_size), jnp.float32),
        "ln1_b": jnp.zeros((num_layers, 1, embed_size), jnp.float32),
        "w1": jnp.stack(w1).astype(jnp.bfloat16),
        "b1": jnp.zeros((num_layers, 1, hidden_dim), jnp.float32),
        "w2": jnp.stack(w2).astype(jnp.bfloat16),
        "b2": jnp.zeros((num_layers, 1, embed_size), jnp.float32),
        "ln2_g": jnp.ones((num_layers, 1, embed_size), jnp.float32),
        "ln2_b": jnp.zeros((num_layers, 1, embed_size), jnp.float32),
        "fc_w": fc_w.astype(jnp.bfloat16),
        "fc_b": fc_b,
    }


# ---------------------------------------------------------------------------
# Demo
# ---------------------------------------------------------------------------

if __name__ == "__main__":
    vocab_size = 100
    embed_size = 32
    num_heads = 4
    hidden_dim = 64
    num_layers = 2
    num_classes = 5
    batch, seq = 2, 8

    root = jax.random.PRNGKey(0)
    k_params, k_ids = jax.random.split(root)

    params = init_params(k_params, vocab_size, embed_size, num_heads,
                         hidden_dim, num_layers, num_classes)

    input_ids = jax.random.randint(k_ids, (batch, seq), 0, vocab_size,
                                   dtype=jnp.int32)
    # key-padding mask: True == pad (ignored key), matching
    # src_key_padding_mask semantics of nn.TransformerEncoder.
    attention_mask = jnp.array(
        [[False, False, False, False, False, False, False, False],
         [False, False, False, False, False, False, True,  True]],
        dtype=jnp.bool_)

    log_probs = conversation_model_forward(
        input_ids, attention_mask, params,
        num_heads=num_heads, num_classes=num_classes)
    jax.block_until_ready(log_probs)

    assert log_probs.shape == (batch, num_classes)
    assert bool(jnp.all(jnp.isfinite(log_probs)))
    # log-softmax rows must sum (in prob space) to ~1
    assert bool(jnp.allclose(jnp.sum(jnp.exp(log_probs), axis=1), 1.0,
                             atol=1e-4))
    # agree with a pure-JAX f32 reference (bf16 matmul inputs in the kernel)
    ref = reference_forward(input_ids, attention_mask, params,
                            num_heads=num_heads, num_classes=num_classes)
    assert bool(jnp.max(jnp.abs(log_probs - ref)) < 0.1)
    print("KERNEL_OK")
</pallas_src>

<mosaic_0001>
module attributes {stable_mosaic.version = 11 : i64} {
  func.func @fused_transformer_kernel(%arg0: i32, %arg1: i32, %arg2: memref<1x8x32xf32, #tpu.memory_space<vmem>>, %arg3: memref<1x1x8xf32, #tpu.memory_space<vmem>>, %arg4: memref<1x12x32x8xbf16, #tpu.memory_space<vmem>>, %arg5: memref<1x12x1x8xf32, #tpu.memory_space<vmem>>, %arg6: memref<1x4x8x32xbf16, #tpu.memory_space<vmem>>, %arg7: memref<1x1x32xf32, #tpu.memory_space<vmem>>, %arg8: memref<1x1x32xf32, #tpu.memory_space<vmem>>, %arg9: memref<1x1x32xf32, #tpu.memory_space<vmem>>, %arg10: memref<1x32x64xbf16, #tpu.memory_space<vmem>>, %arg11: memref<1x1x64xf32, #tpu.memory_space<vmem>>, %arg12: memref<1x64x32xbf16, #tpu.memory_space<vmem>>, %arg13: memref<1x1x32xf32, #tpu.memory_space<vmem>>, %arg14: memref<1x1x32xf32, #tpu.memory_space<vmem>>, %arg15: memref<1x1x32xf32, #tpu.memory_space<vmem>>, %arg16: memref<32x128xbf16, #tpu.memory_space<vmem>>, %arg17: memref<1x128xf32, #tpu.memory_space<vmem>>, %arg18: memref<1x1x128xf32, #tpu.memory_space<vmem>>, %arg19: memref<8x32xf32, #tpu.memory_space<vmem>>) attributes {dimension_semantics = [#tpu.dimension_semantics<parallel>, #tpu.dimension_semantics<arbitrary>], iteration_bounds = array<i64: 2, 2>, scalar_prefetch = 0 : i64, scratch_operands = 1 : i64, tpu.core_type = #tpu.core_type<tc>, window_params = [{transform_indices = @transform_0, window_bounds = array<i64: 1, 8, 32>}, {transform_indices = @transform_1, window_bounds = array<i64: 1, 1, 8>}, {transform_indices = @transform_2, window_bounds = array<i64: 1, 12, 32, 8>}, {transform_indices = @transform_3, window_bounds = array<i64: 1, 12, 1, 8>}, {transform_indices = @transform_4, window_bounds = array<i64: 1, 4, 8, 32>}, {transform_indices = @transform_5, window_bounds = array<i64: 1, 1, 32>}, {transform_indices = @transform_6, window_bounds = array<i64: 1, 1, 32>}, {transform_indices = @transform_7, window_bounds = array<i64: 1, 1, 32>}, {transform_indices = @transform_8, window_bounds = array<i64: 1, 32, 64>}, {transform_indices = @transform_9, window_bounds = array<i64: 1, 1, 64>}, {transform_indices = @transform_10, window_bounds = array<i64: 1, 64, 32>}, {transform_indices = @transform_11, window_bounds = array<i64: 1, 1, 32>}, {transform_indices = @transform_12, window_bounds = array<i64: 1, 1, 32>}, {transform_indices = @transform_13, window_bounds = array<i64: 1, 1, 32>}, {pipeline_mode = #tpu.pipeline_mode<synchronous>, transform_indices = @transform_14, window_bounds = array<i64: 32, 128>}, {pipeline_mode = #tpu.pipeline_mode<synchronous>, transform_indices = @transform_15, window_bounds = array<i64: 1, 128>}, {transform_indices = @transform_16, window_bounds = array<i64: 1, 1, 128>}]} {
    %c0_i32 = arith.constant 0 : i32
    %0 = arith.cmpi eq, %arg1, %c0_i32 : i32
    %1 = arith.extui %0 : i1 to i32
    %c0_i32_0 = arith.constant 0 : i32
    %2 = arith.cmpi ne, %1, %c0_i32_0 : i32
    scf.if %2 {
      %c0_67 = arith.constant 0 : index
      %c0_68 = arith.constant 0 : index
      %c0_69 = arith.constant 0 : index
      %126 = vector.load %arg2[%c0_67, %c0_68, %c0_69] : memref<1x8x32xf32, #tpu.memory_space<vmem>>, vector<1x8x32xf32>
      %127 = vector.shape_cast %126 : vector<1x8x32xf32> to vector<8x32xf32>
      %c0_70 = arith.constant 0 : index
      %c0_71 = arith.constant 0 : index
      %128 = vector.load %arg19[%c0_70, %c0_71] : memref<8x32xf32, #tpu.memory_space<vmem>>, vector<8x32xf32>
      tpu.vector_store %arg19[%c0_70, %c0_71], %127 {strides = array<i32>} : memref<8x32xf32, #tpu.memory_space<vmem>>, vector<8x32xf32>,
    } else {
    }
    %c0 = arith.constant 0 : index
    %c0_1 = arith.constant 0 : index
    %3 = vector.load %arg19[%c0, %c0_1] : memref<8x32xf32, #tpu.memory_space<vmem>>, vector<8x32xf32>
    %c0_2 = arith.constant 0 : index
    %c0_3 = arith.constant 0 : index
    %c0_4 = arith.constant 0 : index
    %c0_5 = arith.constant 0 : index
    %4 = vector.load %arg4[%c0_2, %c0_3, %c0_4, %c0_5] : memref<1x12x32x8xbf16, #tpu.memory_space<vmem>>, vector<1x12x32x8xbf16>
    %5 = vector.shape_cast %4 : vector<1x12x32x8xbf16> to vector<12x32x8xbf16>
    %c0_6 = arith.constant 0 : index
    %c0_7 = arith.constant 0 : index
    %c0_8 = arith.constant 0 : index
    %c0_9 = arith.constant 0 : index
    %6 = vector.load %arg5[%c0_6, %c0_7, %c0_8, %c0_9] : memref<1x12x1x8xf32, #tpu.memory_space<vmem>>, vector<1x12x1x8xf32>
    %7 = vector.shape_cast %6 : vector<1x12x1x8xf32> to vector<12x1x8xf32>
    %c0_10 = arith.constant 0 : index
    %c0_11 = arith.constant 0 : index
    %c0_12 = arith.constant 0 : index
    %c0_13 = arith.constant 0 : index
    %8 = vector.load %arg6[%c0_10, %c0_11, %c0_12, %c0_13] : memref<1x4x8x32xbf16, #tpu.memory_space<vmem>>, vector<1x4x8x32xbf16>
    %9 = vector.shape_cast %8 : vector<1x4x8x32xbf16> to vector<4x8x32xbf16>
    %c0_14 = arith.constant 0 : index
    %c0_15 = arith.constant 0 : index
    %c0_16 = arith.constant 0 : index
    %10 = vector.load %arg7[%c0_14, %c0_15, %c0_16] : memref<1x1x32xf32, #tpu.memory_space<vmem>>, vector<1x1x32xf32>
    %11 = vector.shape_cast %10 : vector<1x1x32xf32> to vector<1x32xf32>
    %c0_17 = arith.constant 0 : index
    %c0_18 = arith.constant 0 : index
    %c0_19 = arith.constant 0 : index
    %12 = vector.load %arg8[%c0_17, %c0_18, %c0_19] : memref<1x1x32xf32, #tpu.memory_space<vmem>>, vector<1x1x32xf32>
    %13 = vector.shape_cast %12 : vector<1x1x32xf32> to vector<1x32xf32>
    %c0_20 = arith.constant 0 : index
    %c0_21 = arith.constant 0 : index
    %c0_22 = arith.constant 0 : index
    %14 = vector.load %arg9[%c0_20, %c0_21, %c0_22] : memref<1x1x32xf32, #tpu.memory_space<vmem>>, vector<1x1x32xf32>
    %15 = vector.shape_cast %14 : vector<1x1x32xf32> to vector<1x32xf32>
    %c0_23 = arith.constant 0 : index
    %c0_24 = arith.constant 0 : index
    %c0_25 = arith.constant 0 : index
    %16 = vector.load %arg10[%c0_23, %c0_24, %c0_25] : memref<1x32x64xbf16, #tpu.memory_space<vmem>>, vector<1x32x64xbf16>
    %17 = vector.shape_cast %16 : vector<1x32x64xbf16> to vector<32x64xbf16>
    %c0_26 = arith.constant 0 : index
    %c0_27 = arith.constant 0 : index
    %c0_28 = arith.constant 0 : index
    %18 = vector.load %arg11[%c0_26, %c0_27, %c0_28] : memref<1x1x64xf32, #tpu.memory_space<vmem>>, vector<1x1x64xf32>
    %19 = vector.shape_cast %18 : vector<1x1x64xf32> to vector<1x64xf32>
    %c0_29 = arith.constant 0 : index
    %c0_30 = arith.constant 0 : index
    %c0_31 = arith.constant 0 : index
    %20 = vector.load %arg12[%c0_29, %c0_30, %c0_31] : memref<1x64x32xbf16, #tpu.memory_space<vmem>>, vector<1x64x32xbf16>
    %21 = vector.shape_cast %20 : vector<1x64x32xbf16> to vector<64x32xbf16>
    %c0_32 = arith.constant 0 : index
    %c0_33 = arith.constant 0 : index
    %c0_34 = arith.constant 0 : index
    %22 = vector.load %arg13[%c0_32, %c0_33, %c0_34] : memref<1x1x32xf32, #tpu.memory_space<vmem>>, vector<1x1x32xf32>
    %23 = vector.shape_cast %22 : vector<1x1x32xf32> to vector<1x32xf32>
    %c0_35 = arith.constant 0 : index
    %c0_36 = arith.constant 0 : index
    %c0_37 = arith.constant 0 : index
    %24 = vector.load %arg14[%c0_35, %c0_36, %c0_37] : memref<1x1x32xf32, #tpu.memory_space<vmem>>, vector<1x1x32xf32>
    %25 = vector.shape_cast %24 : vector<1x1x32xf32> to vector<1x32xf32>
    %c0_38 = arith.constant 0 : index
    %c0_39 = arith.constant 0 : index
    %c0_40 = arith.constant 0 : index
    %26 = vector.load %arg15[%c0_38, %c0_39, %c0_40] : memref<1x1x32xf32, #tpu.memory_space<vmem>>, vector<1x1x32xf32>
    %27 = vector.shape_cast %26 : vector<1x1x32xf32> to vector<1x32xf32>
    %28 = arith.truncf %3 : vector<8x32xf32> to vector<8x32xbf16>
    %29 = vector.shape_cast %28 : vector<8x32xbf16> to vector<1x8x32xbf16>
    %30 = vector.shape_cast %29 : vector<1x8x32xbf16> to vector<1x8x32xbf16>
    %31 = vector.broadcast %30 : vector<1x8x32xbf16> to vector<12x8x32xbf16>
    "tpu.trace_start"() <{level = 10 : i32, message = "gse,ged->gsd"}> : () -> ()
    %cst = arith.constant dense<0.000000e+00> : vector<12x8x8xf32>
    %32 = tpu.matmul %31, %5, %cst {dimension_numbers = #tpu.dot_dimension_numbers<[2], [1], [1], [2], [0, 0, 0, 1, 1, 2], [0], [0]>} : vector<12x8x32xbf16>, vector<12x32x8xbf16>, vector<12x8x8xf32> -> vector<12x8x8xf32>
    "tpu.trace_stop"() : () -> ()
    %33 = vector.broadcast %7 : vector<12x1x8xf32> to vector<12x8x8xf32>
    %34 = arith.addf %32, %33 : vector<12x8x8xf32>
    %35 = vector.extract_strided_slice %34 {offsets = [0, 0, 0], sizes = [4, 8, 8], strides = [1, 1, 1]} : vector<12x8x8xf32> to vector<4x8x8xf32>
    %cst_41 = arith.constant 0.353553385 : f32
    %36 = vector.broadcast %cst_41 : f32 to vector<4x8x8xf32>
    %37 = arith.mulf %35, %36 : vector<4x8x8xf32>
    %38 = vector.extract_strided_slice %34 {offsets = [4, 0, 0], sizes = [4, 8, 8], strides = [1, 1, 1]} : vector<12x8x8xf32> to vector<4x8x8xf32>
    %39 = vector.extract_strided_slice %34 {offsets = [8, 0, 0], sizes = [4, 8, 8], strides = [1, 1, 1]} : vector<12x8x8xf32> to vector<4x8x8xf32>
    %40 = arith.truncf %37 : vector<4x8x8xf32> to vector<4x8x8xbf16>
    %41 = arith.truncf %38 : vector<4x8x8xf32> to vector<4x8x8xbf16>
    "tpu.trace_start"() <{level = 10 : i32, message = "hqd,hkd->hqk"}> : () -> ()
    %cst_42 = arith.constant dense<0.000000e+00> : vector<4x8x8xf32>
    %42 = tpu.matmul %40, %41, %cst_42 {dimension_numbers = #tpu.dot_dimension_numbers<[2], [2], [1], [1], [0, 0, 0, 1, 1, 1], [0], [0]>} : vector<4x8x8xbf16>, vector<4x8x8xbf16>, vector<4x8x8xf32> -> vector<4x8x8xf32>
    "tpu.trace_stop"() : () -> ()
    %c0_43 = arith.constant 0 : index
    %c0_44 = arith.constant 0 : index
    %c0_45 = arith.constant 0 : index
    %43 = vector.load %arg3[%c0_43, %c0_44, %c0_45] : memref<1x1x8xf32, #tpu.memory_space<vmem>>, vector<1x1x8xf32>
    %44 = vector.shape_cast %43 : vector<1x1x8xf32> to vector<1x8xf32>
    %45 = vector.shape_cast %44 : vector<1x8xf32> to vector<1x1x8xf32>
    %46 = vector.broadcast %45 : vector<1x1x8xf32> to vector<4x8x8xf32>
    %47 = arith.addf %42, %46 : vector<4x8x8xf32>
    %cst_46 = arith.constant dense<0xFF800000> : vector<4x8xf32>
    %48 = vector.multi_reduction <maximumf>, %47, %cst_46 [2] : vector<4x8x8xf32> to vector<4x8xf32>
    %49 = vector.shape_cast %48 : vector<4x8xf32> to vector<4x8x1xf32>
    %50 = vector.broadcast %49 : vector<4x8x1xf32> to vector<4x8x8xf32>
    %51 = arith.subf %47, %50 : vector<4x8x8xf32>
    %52 = math.exp %51 : vector<4x8x8xf32>
    %cst_47 = arith.constant dense<0.000000e+00> : vector<4x8xf32>
    %53 = vector.multi_reduction <add>, %52, %cst_47 [2] : vector<4x8x8xf32> to vector<4x8xf32>
    %54 = vector.shape_cast %53 : vector<4x8xf32> to vector<4x8x1xf32>
    %55 = tpu.reciprocal %54 {approx = true} : vector<4x8x1xf32> -> vector<4x8x1xf32>
    %56 = vector.broadcast %55 : vector<4x8x1xf32> to vector<4x8x8xf32>
    %57 = arith.mulf %52, %56 : vector<4x8x8xf32>
    %58 = arith.truncf %57 : vector<4x8x8xf32> to vector<4x8x8xbf16>
    %59 = arith.truncf %39 : vector<4x8x8xf32> to vector<4x8x8xbf16>
    "tpu.trace_start"() <{level = 10 : i32, message = "hqk,hkd->hqd"}> : () -> ()
    %cst_48 = arith.constant dense<0.000000e+00> : vector<4x8x8xf32>
    %60 = tpu.matmul %58, %59, %cst_48 {dimension_numbers = #tpu.dot_dimension_numbers<[2], [1], [1], [2], [0, 0, 0, 1, 1, 2], [0], [0]>} : vector<4x8x8xbf16>, vector<4x8x8xbf16>, vector<4x8x8xf32> -> vector<4x8x8xf32>
    "tpu.trace_stop"() : () -> ()
    %61 = arith.truncf %60 : vector<4x8x8xf32> to vector<4x8x8xbf16>
    "tpu.trace_start"() <{level = 10 : i32, message = "hsd,hde->hse"}> : () -> ()
    %cst_49 = arith.constant dense<0.000000e+00> : vector<4x8x32xf32>
    %62 = tpu.matmul %61, %9, %cst_49 {dimension_numbers = #tpu.dot_dimension_numbers<[2], [1], [1], [2], [0, 0, 0, 1, 1, 2], [0], [0]>} : vector<4x8x8xbf16>, vector<4x8x32xbf16>, vector<4x8x32xf32> -> vector<4x8x32xf32>
    "tpu.trace_stop"() : () -> ()
    %cst_50 = arith.constant dense<0.000000e+00> : vector<8x32xf32>
    %63 = vector.multi_reduction <add>, %62, %cst_50 [0] : vector<4x8x32xf32> to vector<8x32xf32>
    %64 = vector.broadcast %11 : vector<1x32xf32> to vector<8x32xf32>
    %65 = arith.addf %63, %64 : vector<8x32xf32>
    %66 = arith.addf %3, %65 : vector<8x32xf32>
    %cst_51 = arith.constant dense<0.000000e+00> : vector<8xf32>
    %67 = vector.multi_reduction <add>, %66, %cst_51 [1] : vector<8x32xf32> to vector<8xf32>
    %68 = vector.shape_cast %67 : vector<8xf32> to vector<8x1xf32>
    %cst_52 = arith.constant 3.200000e+01 : f32
    %69 = vector.broadcast %cst_52 : f32 to vector<8x1xf32>
    %70 = arith.divf %68, %69 : vector<8x1xf32>
    %71 = vector.broadcast %70 : vector<8x1xf32> to vector<8x32xf32>
    %72 = arith.subf %66, %71 : vector<8x32xf32>
    %73 = arith.mulf %72, %72 : vector<8x32xf32>
    %cst_53 = arith.constant dense<0.000000e+00> : vector<8xf32>
    %74 = vector.multi_reduction <add>, %73, %cst_53 [1] : vector<8x32xf32> to vector<8xf32>
    %75 = vector.shape_cast %74 : vector<8xf32> to vector<8x1xf32>
    %cst_54 = arith.constant 3.200000e+01 : f32
    %76 = vector.broadcast %cst_54 : f32 to vector<8x1xf32>
    %77 = arith.divf %75, %76 : vector<8x1xf32>
    %78 = vector.broadcast %70 : vector<8x1xf32> to vector<8x32xf32>
    %79 = arith.subf %66, %78 : vector<8x32xf32>
    %cst_55 = arith.constant 9.99999974E-6 : f32
    %80 = vector.broadcast %cst_55 : f32 to vector<8x1xf32>
    %81 = arith.addf %77, %80 : vector<8x1xf32>
    %82 = math.rsqrt %81 : vector<8x1xf32>
    %83 = vector.broadcast %82 : vector<8x1xf32> to vector<8x32xf32>
    %84 = arith.mulf %79, %83 : vector<8x32xf32>
    %85 = vector.broadcast %13 : vector<1x32xf32> to vector<8x32xf32>
    %86 = arith.mulf %84, %85 : vector<8x32xf32>
    %87 = vector.broadcast %15 : vector<1x32xf32> to vector<8x32xf32>
    %88 = arith.addf %86, %87 : vector<8x32xf32>
    %89 = arith.truncf %88 : vector<8x32xf32> to vector<8x32xbf16>
    %cst_56 = arith.constant dense<0.000000e+00> : vector<8x64xf32>
    %90 = tpu.matmul %89, %17, %cst_56 {dimension_numbers = #tpu.dot_dimension_numbers<[1], [0], [0], [1], [0, 0, 1, 1], [], []>} : vector<8x32xbf16>, vector<32x64xbf16>, vector<8x64xf32> -> vector<8x64xf32>
    %91 = vector.broadcast %19 : vector<1x64xf32> to vector<8x64xf32>
    %92 = arith.addf %90, %91 : vector<8x64xf32>
    %cst_57 = arith.constant 0.000000e+00 : f32
    %93 = vector.broadcast %cst_57 : f32 to vector<8x64xf32>
    %94 = arith.maximumf %92, %93 : vector<8x64xf32>
    %95 = arith.truncf %94 : vector<8x64xf32> to vector<8x64xbf16>
    %cst_58 = arith.constant dense<0.000000e+00> : vector<8x32xf32>
    %96 = tpu.matmul %95, %21, %cst_58 {dimension_numbers = #tpu.dot_dimension_numbers<[1], [0], [0], [1], [0, 0, 1, 1], [], []>} : vector<8x64xbf16>, vector<64x32xbf16>, vector<8x32xf32> -> vector<8x32xf32>
    %97 = vector.broadcast %23 : vector<1x32xf32> to vector<8x32xf32>
    %98 = arith.addf %96, %97 : vector<8x32xf32>
    %99 = arith.addf %88, %98 : vector<8x32xf32>
    %cst_59 = arith.constant dense<0.000000e+00> : vector<8xf32>
    %100 = vector.multi_reduction <add>, %99, %cst_59 [1] : vector<8x32xf32> to vector<8xf32>
    %101 = vector.shape_cast %100 : vector<8xf32> to vector<8x1xf32>
    %cst_60 = arith.constant 3.200000e+01 : f32
    %102 = vector.broadcast %cst_60 : f32 to vector<8x1xf32>
    %103 = arith.divf %101, %102 : vector<8x1xf32>
    %104 = vector.broadcast %103 : vector<8x1xf32> to vector<8x32xf32>
    %105 = arith.subf %99, %104 : vector<8x32xf32>
    %106 = arith.mulf %105, %105 : vector<8x32xf32>
    %cst_61 = arith.constant dense<0.000000e+00> : vector<8xf32>
    %107 = vector.multi_reduction <add>, %106, %cst_61 [1] : vector<8x32xf32> to vector<8xf32>
    %108 = vector.shape_cast %107 : vector<8xf32> to vector<8x1xf32>
    %cst_62 = arith.constant 3.200000e+01 : f32
    %109 = vector.broadcast %cst_62 : f32 to vector<8x1xf32>
    %110 = arith.divf %108, %109 : vector<8x1xf32>
    %111 = vector.broadcast %103 : vector<8x1xf32> to vector<8x32xf32>
    %112 = arith.subf %99, %111 : vector<8x32xf32>
    %cst_63 = arith.constant 9.99999974E-6 : f32
    %113 = vector.broadcast %cst_63 : f32 to vector<8x1xf32>
    %114 = arith.addf %110, %113 : vector<8x1xf32>
    %115 = math.rsqrt %114 : vector<8x1xf32>
    %116 = vector.broadcast %115 : vector<8x1xf32> to vector<8x32xf32>
    %117 = arith.mulf %112, %116 : vector<8x32xf32>
    %118 = vector.broadcast %25 : vector<1x32xf32> to vector<8x32xf32>
    %119 = arith.mulf %117, %118 : vector<8x32xf32>
    %120 = vector.broadcast %27 : vector<1x32xf32> to vector<8x32xf32>
    %121 = arith.addf %119, %120 : vector<8x32xf32>
    %c0_64 = arith.constant 0 : index
    %c0_65 = arith.constant 0 : index
    %122 = vector.load %arg19[%c0_64, %c0_65] : memref<8x32xf32, #tpu.memory_space<vmem>>, vector<8x32xf32>
    tpu.vector_store %arg19[%c0_64, %c0_65], %121 {strides = array<i32>} : memref<8x32xf32, #tpu.memory_space<vmem>>, vector<8x32xf32>,
    %c1_i32 = arith.constant 1 : i32
    %123 = arith.cmpi eq, %arg1, %c1_i32 : i32
    %124 = arith.extui %123 : i1 to i32
    %c0_i32_66 = arith.constant 0 : i32
    %125 = arith.cmpi ne, %124, %c0_i32_66 : i32
    scf.if %125 {
      %cst_67 = arith.constant dense<0.000000e+00> : vector<32xf32>
      %126 = vector.multi_reduction <add>, %121, %cst_67 [0] : vector<8x32xf32> to vector<32xf32>
      %127 = vector.shape_cast %126 : vector<32xf32> to vector<1x32xf32>
      %cst_68 = arith.constant 8.000000e+00 : f32
      %128 = vector.broadcast %cst_68 : f32 to vector<1x32xf32>
      %129 = arith.divf %127, %128 : vector<1x32xf32>
      %130 = arith.truncf %129 : vector<1x32xf32> to vector<1x32xbf16>
      %c0_69 = arith.constant 0 : index
      %c0_70 = arith.constant 0 : index
      %131 = vector.load %arg16[%c0_69, %c0_70] : memref<32x128xbf16, #tpu.memory_space<vmem>>, vector<32x128xbf16>
      %cst_71 = arith.constant dense<0.000000e+00> : vector<1x128xf32>
      %132 = tpu.matmul %130, %131, %cst_71 {dimension_numbers = #tpu.dot_dimension_numbers<[1], [0], [0], [1], [0, 0, 1, 1], [], []>} : vector<1x32xbf16>, vector<32x128xbf16>, vector<1x128xf32> -> vector<1x128xf32>
      %c0_72 = arith.constant 0 : index
      %c0_73 = arith.constant 0 : index
      %133 = vector.load %arg17[%c0_72, %c0_73] : memref<1x128xf32, #tpu.memory_space<vmem>>, vector<1x128xf32>
      %134 = arith.addf %132, %133 : vector<1x128xf32>
      %cst_74 = arith.constant dense<0xFF800000> : vector<1xf32>
      %135 = vector.multi_reduction <maximumf>, %134, %cst_74 [1] : vector<1x128xf32> to vector<1xf32>
      %136 = vector.shape_cast %135 : vector<1xf32> to vector<1x1xf32>
      %137 = vector.broadcast %136 : vector<1x1xf32> to vector<1x128xf32>
      %138 = arith.subf %134, %137 : vector<1x128xf32>
      %139 = math.exp %138 : vector<1x128xf32>
      %cst_75 = arith.constant dense<0.000000e+00> : vector<1xf32>
      %140 = vector.multi_reduction <add>, %139, %cst_75 [1] : vector<1x128xf32> to vector<1xf32>
      %141 = vector.shape_cast %140 : vector<1xf32> to vector<1x1xf32>
      %142 = math.log %141 : vector<1x1xf32>
      %143 = vector.broadcast %142 : vector<1x1xf32> to vector<1x128xf32>
      %144 = arith.subf %138, %143 : vector<1x128xf32>
      %c0_76 = arith.constant 0 : index
      %c0_77 = arith.constant 0 : index
      %c0_78 = arith.constant 0 : index
      %145 = vector.load %arg18[%c0_76, %c0_77, %c0_78] : memref<1x1x128xf32, #tpu.memory_space<vmem>>, vector<1x1x128xf32>
      %146 = vector.shape_cast %145 : vector<1x1x128xf32> to vector<1x128xf32>
      %147 = vector.shape_cast %144 : vector<1x128xf32> to vector<1x1x128xf32>
      tpu.vector_store %arg18[%c0_76, %c0_77, %c0_78], %147 {strides = array<i32>} : memref<1x1x128xf32, #tpu.memory_space<vmem>>, vector<1x1x128xf32>,
    } else {
    }
    return
  }
  func.func @transform_0(%arg0: i32, %arg1: i32) -> (i32, i32, i32) {
    %c0_i32 = arith.constant 0 : i32
    %c0_i32_0 = arith.constant 0 : i32
    %c0_i32_1 = arith.constant 0 : i32
    return %arg0, %c0_i32, %c0_i32_0 : i32, i32, i32
  }
  func.func @transform_1(%arg0: i32, %arg1: i32) -> (i32, i32, i32) {
    %c0_i32 = arith.constant 0 : i32
    %c0_i32_0 = arith.constant 0 : i32
    %c0_i32_1 = arith.constant 0 : i32
    return %arg0, %c0_i32, %c0_i32_0 : i32, i32, i32
  }
  func.func @transform_2(%arg0: i32, %arg1: i32) -> (i32, i32, i32, i32) {
    %c0_i32 = arith.constant 0 : i32
    %c0_i32_0 = arith.constant 0 : i32
    %c0_i32_1 = arith.constant 0 : i32
    %c0_i32_2 = arith.constant 0 : i32
    return %arg1, %c0_i32, %c0_i32_0, %c0_i32_1 : i32, i32, i32, i32
  }
  func.func @transform_3(%arg0: i32, %arg1: i32) -> (i32, i32, i32, i32) {
    %c0_i32 = arith.constant 0 : i32
    %c0_i32_0 = arith.constant 0 : i32
    %c0_i32_1 = arith.constant 0 : i32
    %c0_i32_2 = arith.constant 0 : i32
    return %arg1, %c0_i32, %c0_i32_0, %c0_i32_1 : i32, i32, i32, i32
  }
  func.func @transform_4(%arg0: i32, %arg1: i32) -> (i32, i32, i32, i32) {
    %c0_i32 = arith.constant 0 : i32
    %c0_i32_0 = arith.constant 0 : i32
    %c0_i32_1 = arith.constant 0 : i32
    %c0_i32_2 = arith.constant 0 : i32
    return %arg1, %c0_i32, %c0_i32_0, %c0_i32_1 : i32, i32, i32, i32
  }
  func.func @transform_5(%arg0: i32, %arg1: i32) -> (i32, i32, i32) {
    %c0_i32 = arith.constant 0 : i32
    %c0_i32_0 = arith.constant 0 : i32
    %c0_i32_1 = arith.constant 0 : i32
    return %arg1, %c0_i32, %c0_i32_0 : i32, i32, i32
  }
  func.func @transform_6(%arg0: i32, %arg1: i32) -> (i32, i32, i32) {
    %c0_i32 = arith.constant 0 : i32
    %c0_i32_0 = arith.constant 0 : i32
    %c0_i32_1 = arith.constant 0 : i32
    return %arg1, %c0_i32, %c0_i32_0 : i32, i32, i32
  }
  func.func @transform_7(%arg0: i32, %arg1: i32) -> (i32, i32, i32) {
    %c0_i32 = arith.constant 0 : i32
    %c0_i32_0 = arith.constant 0 : i32
    %c0_i32_1 = arith.constant 0 : i32
    return %arg1, %c0_i32, %c0_i32_0 : i32, i32, i32
  }
  func.func @transform_8(%arg0: i32, %arg1: i32) -> (i32, i32, i32) {
    %c0_i32 = arith.constant 0 : i32
    %c0_i32_0 = arith.constant 0 : i32
    %c0_i32_1 = arith.constant 0 : i32
    return %arg1, %c0_i32, %c0_i32_0 : i32, i32, i32
  }
  func.func @transform_9(%arg0: i32, %arg1: i32) -> (i32, i32, i32) {
    %c0_i32 = arith.constant 0 : i32
    %c0_i32_0 = arith.constant 0 : i32
    %c0_i32_1 = arith.constant 0 : i32
    return %arg1, %c0_i32, %c0_i32_0 : i32, i32, i32
  }
  func.func @transform_10(%arg0: i32, %arg1: i32) -> (i32, i32, i32) {
    %c0_i32 = arith.constant 0 : i32
    %c0_i32_0 = arith.constant 0 : i32
    %c0_i32_1 = arith.constant 0 : i32
    return %arg1, %c0_i32, %c0_i32_0 : i32, i32, i32
  }
  func.func @transform_11(%arg0: i32, %arg1: i32) -> (i32, i32, i32) {
    %c0_i32 = arith.constant 0 : i32
    %c0_i32_0 = arith.constant 0 : i32
    %c0_i32_1 = arith.constant 0 : i32
    return %arg1, %c0_i32, %c0_i32_0 : i32, i32, i32
  }
  func.func @transform_12(%arg0: i32, %arg1: i32) -> (i32, i32, i32) {
    %c0_i32 = arith.constant 0 : i32
    %c0_i32_0 = arith.constant 0 : i32
    %c0_i32_1 = arith.constant 0 : i32
    return %arg1, %c0_i32, %c0_i32_0 : i32, i32, i32
  }
  func.func @transform_13(%arg0: i32, %arg1: i32) -> (i32, i32, i32) {
    %c0_i32 = arith.constant 0 : i32
    %c0_i32_0 = arith.constant 0 : i32
    %c0_i32_1 = arith.constant 0 : i32
    return %arg1, %c0_i32, %c0_i32_0 : i32, i32, i32
  }
  func.func @transform_14(%arg0: i32, %arg1: i32) -> (i32, i32) {
    %c0_i32 = arith.constant 0 : i32
    %c0_i32_0 = arith.constant 0 : i32
    %c0_i32_1 = arith.constant 0 : i32
    return %c0_i32, %c0_i32_0 : i32, i32
  }
  func.func @transform_15(%arg0: i32, %arg1: i32) -> (i32, i32) {
    %c0_i32 = arith.constant 0 : i32
    %c0_i32_0 = arith.constant 0 : i32
    %c0_i32_1 = arith.constant 0 : i32
    return %c0_i32, %c0_i32_0 : i32, i32
  }
  func.func @transform_16(%arg0: i32, %arg1: i32) -> (i32, i32, i32) {
    %c0_i32 = arith.constant 0 : i32
    %c0_i32_0 = arith.constant 0 : i32
    %c0_i32_1 = arith.constant 0 : i32
    return %arg0, %c0_i32, %c0_i32_0 : i32, i32, i32
  }
}

</mosaic_0001>

<bundles_post_ra>
// kernel: tpu_custom_call.1
= control target key start
LH: loop header
LB: loop body
LE: loop exit
PB: predicated region body
PF: predicated region fallthrough
CT: control target
= control target key end

     0   :  { %s3828_s0 = inlined_call_operand.vmem [shape: f32[2,8,32], index: 0, kind: input, shape index: {}]   ;;  %s3829_s1 = inlined_call_operand.vmem [shape: f32[2,1,8], index: 1, kind: input, shape index: {}]   ;;  %s3830_s2 = inlined_call_operand.vmem [shape: bf16[2,12,32,8], index: 2, kind: input, shape index: {}]   ;;  %s3831_s3 = inlined_call_operand.vmem [shape: f32[2,12,1,8], index: 3, kind: input, shape index: {}]   ;;  %s3832_s4 = inlined_call_operand.vmem [shape: bf16[2,4,8,32], index: 4, kind: input, shape index: {}]   ;;  %s3833_s5 = inlined_call_operand.vmem [shape: f32[2,1,32], index: 5, kind: input, shape index: {}]   ;;  %s3834_s6 = inlined_call_operand.vmem [shape: f32[2,1,32], index: 6, kind: input, shape index: {}]   ;;  %s3835_s7 = inlined_call_operand.vmem [shape: f32[2,1,32], index: 7, kind: input, shape index: {}]   ;;  %s3836_s8 = inlined_call_operand.vmem [shape: bf16[2,32,64], index: 8, kind: input, shape index: {}]   ;;  %s3837_s9 = inlined_call_operand.vmem [shape: f32[2,1,64], index: 9, kind: input, shape index: {}]   ;;  %s3838_s10 = inlined_call_operand.vmem [shape: bf16[2,64,32], index: 10, kind: input, shape index: {}]   ;;  %s3839_s11 = inlined_call_operand.vmem [shape: f32[2,1,32], index: 11, kind: input, shape index: {}]   ;;  %s3840_s12 = inlined_call_operand.vmem [shape: f32[2,1,32], index: 12, kind: input, shape index: {}]   ;;  %s3841_s13 = inlined_call_operand.vmem [shape: f32[2,1,32], index: 13, kind: input, shape index: {}]   ;;  %s3842_s14 = inlined_call_operand.vmem [shape: bf16[32,128], index: 14, kind: input, shape index: {}]   ;;  %s3843_s15 = inlined_call_operand.vmem [shape: f32[1,128], index: 15, kind: input, shape index: {}]   ;;  %s3844_s16 = inlined_call_operand.hbm [shape: f32[2,1,128], index: 16, kind: output, shape index: {}]  }
   0x1   :  { %3860 = sst [smem:[#allocation19_spill]] %s3828_s0 }
   0x2   :  { %3861 = sst [smem:[#allocation20_spill]] %s3829_s1 }
   0x3   :  { %3862 = sst [smem:[#allocation21_spill]] %s3830_s2 }
   0x4   :  { %3863 = sst [smem:[#allocation22_spill]] %s3831_s3 }
   0x5   :  { %3864 = sst [smem:[#allocation23_spill]] %s3832_s4 }
   0x6   :  { %3865 = sst [smem:[#allocation24_spill]] %s3836_s8 }
   0x7   :  { %3866 = sst [smem:[#allocation25_spill]] %s3841_s13 }
   0x8   :  { %3867 = sst [smem:[#allocation26_spill]] %s3842_s14 }
   0x9   :  { %3868 = sst [smem:[#allocation27_spill]] %s3843_s15 }
   0xa   :  { %3869 = sst [smem:[#allocation28_spill]] %s3844_s16 }
   0xb   :  { %21 = vsyncpa [#allocation4], 0 }
   0xc   :  { %23 = vsyncpa [#allocation4 + $0x1], 0  ;;  %s3354_s21 = smov 0   ;;  %s3356_s22 = smov 0  }
   0xd   :  { %s3358_s23 = smov 0   ;;  %s3360_s24 = smov 0  }
   0xe   :  { %s3362_s25 = smov 0   ;;  %s3364_s26 = smov 0  }
   0xf   :  { %s3366_s27 = smov 0   ;;  %s3368_s28 = smov 0  }
  0x10 LB: > { %3870 = sst [smem:[#allocation6_spill]] %s3234_s21  ;;  %s2668_s29 = sadd.s32 4294967295, %s3262_s28   ;;  %s3262_s28 = sphi %s3368_s28, %s29_s28   ;;  %s3258_s27 = sphi %s3366_s27, %s3917_s27   ;;  %s3254_s26 = sphi %s3364_s26, %s3916_s26   ;;  %s3250_s25 = sphi %s3362_s25, %s3921_s25   ;;  %s3246_s24 = sphi %s3360_s24, %s3920_s24   ;;  %s3242_s23 = sphi %s3358_s23, %s3913_s23   ;;  %s3238_s22 = sphi %s3356_s22, %s3919_s22   ;;  %s3234_s21 = sphi %s3354_s21, %s3918_s21  }
  0x11   : > { %3871 = sst [smem:[#allocation7_spill]] %s3242_s23  ;;  %s2669_s30 = sadd.s32 4294967294, %s3262_s28  }
  0x12   : > { %3872 = sst [smem:[#allocation8_spill]] %s3246_s24  ;;  %s38_s0 = sadd.s32 1, %s3254_s26 }
  0x13   : > { %3873 = sst [smem:[#allocation9_spill]] %s3250_s25  ;;  %p39_p0 = scmp.ge.s32.totalorder %s38_s0, 2 }
  0x14   : > { %3874 = sst [smem:[#allocation10_spill]] %s3254_s26  ;;  %s41_s17 = sadd.s32 1, %s3258_s27 }
  0x15   : > { %3875 = sst [smem:[#allocation11_spill]] %s3258_s27  ;;  %p464_p1 = scmp.ne.s32.totalorder %s3242_s23, %s3238_s22 }
  0x16   : > { %3876 = sst [smem:[#allocation12_spill]] %s3262_s28  ;;  %p465_p2 = scmp.eq.s32.totalorder %s2668_s29, 3 }
  0x17   : > { %s3923_s0 = smov (%p39_p0, %s38_s0), 0  ;;  %s3925_s17 = smov (!%p39_p0, %s41_s17), %s3258_s27 }
  0x18   : > { %3877 = sst [smem:[#allocation13_spill]] %s3923_s0  ;;  %p3403_p3 = por %p465_p2, %p464_p1 }
  0x19   : > { %p470_p4 = scmp.ne.s32.totalorder %s3238_s22, %s3234_s21  ;;  %p43_p5 = scmp.ge.s32.totalorder %s3925_s17, 2 }
  0x1a   : > { %s3878_s18 = scalar_select %p3403_p3, 1, 0 }
  0x1b   : > { %p471_p6 = scmp.eq.s32.totalorder %s2669_s30, 3  ;;  %p2672_p7 = scmp.ge.s32.totalorder %s3262_s28, 1 }
  0x1c   : > { %3879 = sst [smem:[#allocation14_spill]] %s3878_s18  ;;  %p589_p8 = scmp.lt.s32.totalorder %s3262_s28, 5 }
  0x1d   : > { %s3927_s17 = smov (%p43_p5, %s3925_s17), 0  ;;  %p3413_p9 = por %p471_p6, %p470_p4 }
  0x1e   : > { %3880 = sst [smem:[#allocation15_spill]] %s3927_s17  ;;  %p590_p10 = pnand %p2672_p7, %p589_p8 }
  0x1f   : > { %s3881_s19 = scalar_select %p3413_p9, 1, 0 }
  0x20   : > { %s451_s20 = ssub.s32 %s3258_s27, %s3927_s17  ;;  %s454_s29 = sadd.s32 1, %s3242_s23 }
  0x21   : > { %3882 = sst [smem:[#allocation16_spill]] %s3881_s19  ;;  %p452_p11 = scmp.eq.s32.totalorder %s451_s20, 0 }
  0x22   : > { %593 = sbr.rel (%p590_p10) target bundleno = 2928 (0xb70), region = 84 }
  0x23   : > { %s3421_s0 = scalar_select %p452_p11, %s3242_s23, %s454_s29  }
  0x25   : > { %3883 = sst [smem:[#allocation17_spill]] %s3421_s0 }
  0x29   : > { %p685_p12 = scmp.lt.s32.totalorder %s3250_s25, 1  ;;  %p692_p13 = scmp.lt.s32.totalorder %s3246_s24, 1 }
  0x2a   : > { %s3886_s23 = sld [smem:[#allocation19_spill]]  ;;  %s3887_s2 = sld [smem:[#allocation21_spill]] }
  0x2b   : > { %s3427_s26 = scalar_select %p685_p12, %s3250_s25, 1 }
  0x2c   : > { %s3430_s19 = scalar_select %p692_p13, %s3246_s24, 1 }
  0x2d   : > { %3884 = sst [smem:[#allocation18_spill]] %s3427_s26  ;;  %s2673_s20 = sshll.u32 %s3427_s26, 3 }
  0x2e   : > { %s3035_s28 = smul.u32 192, %s3430_s19  ;;  %s2765_s18 = sshll.u32 %s3430_s19, 4 }
  0x2f   : > { %s3036_s16 = smul.u32 12, %s3430_s19  ;;  %s3888_s4 = sld [smem:[#allocation23_spill]] }
  0x30   : > { %s688_s21 = scalar_lea.vmem %s3886_s23, %s2673_s20  ;;  %s3446_s14 = scalar_lea.vmem %s3887_s2, %s3035_s28 }
  0x31   : > { %s3889_s3 = sld [smem:[#allocation22_spill]]  ;;  %s3890_s8 = sld [smem:[#allocation24_spill]] }
  0x32   : > { %s730_s20 = scalar_lea.vmem %s3839_s11, %s3430_s19  ;;  %s733_s13 = scalar_lea.vmem %s3840_s12, %s3430_s19 }
  0x33   : > { %s3891_s2 = sld [smem:[#allocation25_spill]]  ;;  %s3892_s17 = sand.u32 1, %s3238_s22  }
  0x34   : > { %s3893_s29 = sld [smem:[#allocation8_spill]] }
  0x35   : > { %s3451_s30 = scalar_lea.vmem %s3888_s4, %s2765_s18 }
  0x37   : > { %s3456_s27 = scalar_lea.vmem %s3889_s3, %s3036_s16  ;;  %s3473_s4 = scalar_lea.vmem %s3890_s8, %s2765_s18 }
  0x38   : > { %s2767_s3 = sshll.u32 %s3430_s19, 5  ;;  %s3499_s16 = scalar_lea.vmem [#allocation3], %s3892_s17 }
  0x39   : > { %s3487_s15 = scalar_lea.vmem %s3838_s10, %s2767_s3  ;;  %s736_s8 = scalar_lea.vmem %s3891_s2, %s3430_s19 }
  0x3a   : > { %p2681_p0 = scmp.ne.s32.totalorder %s3893_s29, 0 }
  0x3b   : > { %v742_v0 = vld [vmem:[%s688_s21] sm:$0xff] (!%p2681_p0)  ;;  %vm743_vm0 = vcmask (!%p2681_p0), 261120  }
  0x3c   : > { %741 = sbr.rel (%p2681_p0) target bundleno = 67 (0x43), region = 88  ;;  %744 = vst.msk [vmem:[#allocation2] sm:$0xff] (!%p2681_p0), %vm743_vm0, %v742_v0 }
  0x43 PF: > { %v3112_v1 = vld [vmem:[%s3446_s14] sm:$0xff]   ;;  %v3264_v2 = vmov 0.0   ;;  %v3113_v3 = vld [vmem:[%s3446_s14 + $0x10] sm:$0xff]   ;;  %v3114_v4 = vld [vmem:[%s3446_s14 + $0x8] sm:$0xff]   ;;  %vm3265_vm1 = vmmov 0   ;;  %vm914_vm2 = vcmask 261120   ;;  %s3897_s23 = scalar_lea.vmem %s3833_s5, %s3430_s19  ;;  %s3898_s1 = scalar_lea.vmem %s3834_s6, %s3430_s19 }
  0x44   : > { %2839 = vmatprep.subr.bf16.mxu0 %v3264_v2  ;;  %2847 = vmatprep.subr.bf16.mxu1 %v3264_v2  ;;  %v3115_v5 = vld [vmem:[%s3446_s14 + $0x18] sm:$0xff]   ;;  %v3514_v6 = vld [vmem:[#allocation2] sm:$0xff]  ;;  %v3117_v9 = vld [vmem:[%s3446_s14 + $0x30] sm:$0xff]   ;;  %vm1549_vm3 = vcmask 64512   ;;  %vm1789_vm4 = vcmask 1043456   ;;  %s3894_s2 = sld [smem:[#allocation18_spill]]  ;;  %s3899_s28 = scalar_lea.vmem %s3835_s7, %s3430_s19 }
  0x45   : > { %2840 = vmatpush3.bf16.msra.mxu0 %v3112_v1  ;;  %2843 = vmatprep.mubr.msk.bf16.mxu0 %vm3265_vm1, %v3264_v2  ;;  %v3518_v7 = vpack.c.bf16 %v3514_v6, %v3514_v6  ;;  %v3116_v8 = vld [vmem:[%s3446_s14 + $0x20] sm:$0xff]   ;;  %v3118_v10 = vld [vmem:[%s3446_s14 + $0x28] sm:$0xff]   ;;  %v3119_v11 = vld [vmem:[%s3446_s14 + $0x38] sm:$0xff]   ;;  %s3895_s21 = sld [smem:[#allocation20_spill]]  ;;  %s3900_s17 = scalar_lea.vmem %s3837_s9, %s3430_s19  ;;  %vm2296_vm5 = vcmask 523264  }
  0x46   : > { %2848 = vmatpush3.bf16.msra.mxu1 %v3113_v3  ;;  %2841 = vmatprep.subr.bf16.mxu0 %v3264_v2  ;;  %v3120_v12 = vld [vmem:[%s3446_s14 + $0x40] sm:$0xff]   ;;  %v3121_v13 = vld [vmem:[%s3446_s14 + $0x50] sm:$0xff]   ;;  %v3122_v14 = vld [vmem:[%s3446_s14 + $0x48] sm:$0xff]  }
  0x47   : > { %2849 = vmatprep.subr.bf16.mxu1 %v3264_v2  ;;  %2851 = vmatprep.mubr.msk.bf16.mxu1 %vm3265_vm1, %v3264_v2  ;;  %v3123_v15 = vld [vmem:[%s3446_s14 + $0x58] sm:$0xff]   ;;  %v3124_v16 = vld [vmem:[%s3446_s14 + $0x60] sm:$0xff]   ;;  %v3125_v17 = vld [vmem:[%s3446_s14 + $0x70] sm:$0xff]  }
  0x48   : > { %v3126_v18 = vld [vmem:[%s3446_s14 + $0x68] sm:$0xff]   ;;  %v3127_v19 = vld [vmem:[%s3446_s14 + $0x78] sm:$0xff]   ;;  %v3128_v20 = vld [vmem:[%s3446_s14 + $0x80] sm:$0xff]  }
  0x49   : > { %2842 = vmatpush3.bf16.msra.mxu0 %v3114_v4  ;;  %v3129_v21 = vld [vmem:[%s3446_s14 + $0x90] sm:$0xff]   ;;  %v3130_v22 = vld [vmem:[%s3446_s14 + $0x88] sm:$0xff]   ;;  %v3131_v23 = vld [vmem:[%s3446_s14 + $0x98] sm:$0xff]  }
  0x4a   : > { %2850 = vmatpush3.bf16.msra.mxu1 %v3115_v5  ;;  %2855 = vmatprep.subr.bf16.mxu0 %v3264_v2  ;;  %v3132_v24 = vld [vmem:[%s3446_s14 + $0xa0] sm:$0xff]   ;;  %v3133_v25 = vld [vmem:[%s3446_s14 + $0xb0] sm:$0xff]   ;;  %v3134_v26 = vld [vmem:[%s3446_s14 + $0xa8] sm:$0xff]  }
  0x4b   : > { %2863 = vmatprep.subr.bf16.mxu1 %v3264_v2  ;;  %v3135_v27 = vld [vmem:[%s3446_s14 + $0xb8] sm:$0xff]   ;;  %v2686_v44 = vld [vmem:[%s3456_s27 + $0x4] ss:$0 sm:$0xff]  ;;  %v2687_v45 = vld [vmem:[%s3456_s27 + $0x5] ss:$0 sm:$0xff]  ;;  %s3896_s29 = scalar_lea.vmem %s3895_s21, %s3894_s2 }
  0x4c   : > { %2844 = vmatmul.mubr.msk.bf16.vlgmr.msra.gmra.mrb[0].mxu0 %vm914_vm2, %v3518_v7  ;;  %v2682_v46 = vld [vmem:[%s3456_s27] ss:$0 sm:$0xff]  ;;  %v2683_v48 = vld [vmem:[%s3456_s27 + $0x1] ss:$0 sm:$0xff]  ;;  %v2688_v0 = vld [vmem:[%s3456_s27 + $0x6] ss:$0 sm:$0xff] }
  0x4d   : > { %2852 = vmatmul.mubr.msk.bf16.vlgmr.msra.gmra.mrb[0].mxu1 %vm914_vm2, %v3518_v7  ;;  %2856 = vmatpush3.bf16.msra.mxu0 %v3116_v8  ;;  %v2689_v3 = vld [vmem:[%s3456_s27 + $0x7] ss:$0 sm:$0xff]  ;;  %v2684_v5 = vld [vmem:[%s3456_s27 + $0x2] ss:$0 sm:$0xff]  ;;  %v2685_v8 = vld [vmem:[%s3456_s27 + $0x3] ss:$0 sm:$0xff] }
  0x4e   : > { %2864 = vmatpush3.bf16.msra.mxu1 %v3117_v9  ;;  %2857 = vmatprep.subr.bf16.mxu0 %v3264_v2 }
  0x4f   : > { %2865 = vmatprep.subr.bf16.mxu1 %v3264_v2  ;;  %2859 = vmatprep.mubr.msk.bf16.mxu0 %vm3265_vm1, %v3264_v2 }
  0x50   : > { %2867 = vmatprep.mubr.msk.bf16.mxu1 %vm3265_vm1, %v3264_v2 }
  0x51   : > { %2858 = vmatpush3.bf16.msra.mxu0 %v3118_v10 }
  0x52   : > { %2866 = vmatpush3.bf16.msra.mxu1 %v3119_v11  ;;  %2871 = vmatprep.subr.bf16.mxu0 %v3264_v2 }
  0x53   : > { %2879 = vmatprep.subr.bf16.mxu1 %v3264_v2 }
  0x54   : > { %2860 = vmatmul.mubr.msk.bf16.vlgmr.msra.gmra.mrb[4].mxu0 %vm914_vm2, %v3518_v7 }
  0x55   : > { %2868 = vmatmul.mubr.msk.bf16.vlgmr.msra.gmra.mrb[4].mxu1 %vm914_vm2, %v3518_v7  ;;  %2872 = vmatpush3.bf16.msra.mxu0 %v3120_v12 }
  0x56   : > { %2880 = vmatpush3.bf16.msra.mxu1 %v3121_v13  ;;  %2873 = vmatprep.subr.bf16.mxu0 %v3264_v2 }
  0x57   : > { %2881 = vmatprep.subr.bf16.mxu1 %v3264_v2  ;;  %2875 = vmatprep.mubr.msk.bf16.mxu0 %vm3265_vm1, %v3264_v2 }
  0x58   : > { %2883 = vmatprep.mubr.msk.bf16.mxu1 %vm3265_vm1, %v3264_v2 }
  0x59   : > { %2874 = vmatpush3.bf16.msra.mxu0 %v3122_v14 }
  0x5a   : > { %2882 = vmatpush3.bf16.msra.mxu1 %v3123_v15  ;;  %2887 = vmatprep.subr.bf16.mxu0 %v3264_v2 }
  0x5b   : > { %2895 = vmatprep.subr.bf16.mxu1 %v3264_v2 }
  0x5c   : > { %2876 = vmatmul.mubr.msk.bf16.vlgmr.msra.gmra.mrb[8].mxu0 %vm914_vm2, %v3518_v7 }
  0x5d   : > { %2884 = vmatmul.mubr.msk.bf16.vlgmr.msra.gmra.mrb[8].mxu1 %vm914_vm2, %v3518_v7  ;;  %2888 = vmatpush3.bf16.msra.mxu0 %v3124_v16 }
  0x5e   : > { %2896 = vmatpush3.bf16.msra.mxu1 %v3125_v17  ;;  %2889 = vmatprep.subr.bf16.mxu0 %v3264_v2 }
  0x5f   : > { %2897 = vmatprep.subr.bf16.mxu1 %v3264_v2  ;;  %2891 = vmatprep.mubr.msk.bf16.mxu0 %vm3265_vm1, %v3264_v2 }
  0x60   : > { %2899 = vmatprep.mubr.msk.bf16.mxu1 %vm3265_vm1, %v3264_v2 }
  0x61   : > { %2890 = vmatpush3.bf16.msra.mxu0 %v3126_v18 }
  0x62   : > { %2898 = vmatpush3.bf16.msra.mxu1 %v3127_v19  ;;  %2903 = vmatprep.subr.bf16.mxu0 %v3264_v2 }
  0x63   : > { %2911 = vmatprep.subr.bf16.mxu1 %v3264_v2 }
  0x64   : > { %2892 = vmatmul.mubr.msk.bf16.vlgmr.msra.gmra.mrb[12].mxu0 %vm914_vm2, %v3518_v7 }
  0x65   : > { %2900 = vmatmul.mubr.msk.bf16.vlgmr.msra.gmra.mrb[12].mxu1 %vm914_vm2, %v3518_v7  ;;  %2904 = vmatpush3.bf16.msra.mxu0 %v3128_v20 }
  0x66   : > { %2905 = vmatprep.subr.bf16.mxu0 %v3264_v2  ;;  %2907 = vmatprep.mubr.msk.bf16.mxu0 %vm3265_vm1, %v3264_v2 }
  0x67   : > { %2915 = vmatprep.mubr.msk.bf16.mxu1 %vm3265_vm1, %v3264_v2  ;;  %2912 = vmatpush3.bf16.msra.mxu1 %v3129_v21 }
  0x68   : > { %2913 = vmatprep.subr.bf16.mxu1 %v3264_v2 }
  0x69   : > { %2906 = vmatpush3.bf16.msra.mxu0 %v3130_v22 }
  0x6a   : > { %2919 = vmatprep.subr.bf16.mxu0 %v3264_v2 }
  0x6b   : > { %2914 = vmatpush3.bf16.msra.mxu1 %v3131_v23 }
  0x6c   : > { %2908 = vmatmul.mubr.msk.bf16.vlgmr.msra.gmra.mrb[16].mxu0 %vm914_vm2, %v3518_v7  ;;  %2927 = vmatprep.subr.bf16.mxu1 %v3264_v2 }
  0x6d   : > { %2923 = vmatprep.mubr.msk.bf16.mxu0 %vm3265_vm1, %v3264_v2  ;;  %2920 = vmatpush3.bf16.msra.mxu0 %v3132_v24 }
  0x6e   : > { %2916 = vmatmul.mubr.msk.bf16.vlgmr.msra.gmra.mrb[16].mxu1 %vm914_vm2, %v3518_v7  ;;  %2921 = vmatprep.subr.bf16.mxu0 %v3264_v2 }
  0x6f   : > { %2928 = vmatpush3.bf16.msra.mxu1 %v3133_v25  ;;  %2931 = vmatprep.mubr.msk.bf16.mxu1 %vm3265_vm1, %v3264_v2 }
  0x70   : > { %2929 = vmatprep.subr.bf16.mxu1 %v3264_v2 }
  0x71   : > { %2922 = vmatpush3.bf16.msra.mxu0 %v3134_v26 }
  0x72   : > { %2935 = vmatprep.subr.bf16.mxu0 %v3264_v2 }
  0x73   : > { %2930 = vmatpush3.bf16.msra.mxu1 %v3135_v27 }
  0x74   : > { %2941 = vmatprep.subr.bf16.mxu1 %v3264_v2  ;;  %2924 = vmatmul.mubr.msk.bf16.vlgmr.msra.gmra.mrb[20].mxu0 %vm914_vm2, %v3518_v7 }
  0x75   : > { %2937 = vmatprep.mubr.msk.bf16.mxu0 %vm3265_vm1, %v3264_v2 }
  0x76   : > { %2932 = vmatmul.mubr.msk.bf16.vlgmr.msra.gmra.mrb[20].mxu1 %vm914_vm2, %v3518_v7 }
  0x77   : > { %2943 = vmatprep.mubr.msk.bf16.mxu1 %vm3265_vm1, %v3264_v2 }
 0x11f   : > { %v952_v28 = vpop.f32.mrb[0].mxu0 }
 0x120   : > { %v2845_v29 = vpop.f32.mrb[1].mxu0  ;;  %v1004_v30 = vpop.f32.mrb[0].mxu1  ;;  %v953_v55 = vadd.f32 %v2682_v46, %v952_v28 }
 0x121   : > { %v955_v31 = vpop.f32.mrb[2].mxu0  ;;  %v2853_v32 = vpop.f32.mrb[1].mxu1  ;;  %v1005_v59 = vadd.f32 %v2683_v48, %v1004_v30  ;;  %v2690_v30 = vld [vmem:[%s3456_s27 + $0x8] ss:$0 sm:$0xff] }
 0x122   : > { %v2846_v33 = vpop.f32.mrb[3].mxu0  ;;  %v1007_v34 = vpop.f32.mrb[2].mxu1  ;;  %v1530_v1 = vmul.f32 0.35355338, %v953_v55  ;;  %v2691_v32 = vld [vmem:[%s3456_s27 + $0x9] ss:$0 sm:$0xff] }
 0x123   : > { %v2854_v35 = vpop.f32.mrb[3].mxu1  ;;  %v1531_v4 = vmul.f32 0.35355338, %v1005_v59 }
 0x124   : > { %v1534_v15 = vpack.c.bf16 %v1530_v1, %v1530_v1 }
 0x125   : > { %v1535_v20 = vpack.c.bf16 %v1531_v4, %v1531_v4 }
 0x127   : > { %v1056_v36 = vpop.f32.mrb[4].mxu0 }
 0x128   : > { %v2861_v37 = vpop.f32.mrb[5].mxu0  ;;  %v1108_v38 = vpop.f32.mrb[4].mxu1  ;;  %v1057_v16 = vadd.f32 %v2684_v5, %v1056_v36 }
 0x129   : > { %v1059_v39 = vpop.f32.mrb[6].mxu0  ;;  %v2869_v40 = vpop.f32.mrb[5].mxu1  ;;  %v1109_v21 = vadd.f32 %v2685_v8, %v1108_v38 }
 0x12a   : > { %v2862_v41 = vpop.f32.mrb[7].mxu0  ;;  %v1111_v42 = vpop.f32.mrb[6].mxu1  ;;  %v1532_v26 = vmul.f32 0.35355338, %v1057_v16 }
 0x12b   : > { %v2870_v43 = vpop.f32.mrb[7].mxu1  ;;  %v1533_v27 = vmul.f32 0.35355338, %v1109_v21 }
 0x12c   : > { %v1536_v28 = vpack.c.bf16 %v1532_v26, %v1532_v26 }
 0x12d   : > { %v1537_v29 = vpack.c.bf16 %v1533_v27, %v1533_v27 }
 0x12f   : > { %v1160_v47 = vpop.f32.mrb[8].mxu0 }
 0x130   : > { %v1161_v49 = vadd.f32 %v2686_v44, %v1160_v47  ;;  %v1212_v50 = vpop.f32.mrb[8].mxu1  ;;  %v2877_v51 = vpop.f32.mrb[9].mxu0 }
 0x131   : > { %v1213_v52 = vadd.f32 %v2687_v45, %v1212_v50  ;;  %v1163_v53 = vpop.f32.mrb[10].mxu0  ;;  %v2885_v54 = vpop.f32.mrb[9].mxu1 }
 0x132   : > { %v1538_v56 = vpack.c.bf16 %v1161_v49, %v1161_v49  ;;  %v2878_v57 = vpop.f32.mrb[11].mxu0  ;;  %v1215_v58 = vpop.f32.mrb[10].mxu1  ;;  %v2730_v54 = vld [vmem:[%s3896_s29] ss:$0 sm:$0xff] }
 0x133   : > { %v1539_v60 = vpack.c.bf16 %v1213_v52, %v1213_v52  ;;  %v2886_v61 = vpop.f32.mrb[11].mxu1 }
 0x134   : > { %v1554_v62 = vsel %vm1549_vm3, %v1538_v56, 0 }
 0x135   : > { %v1600_v63 = vsel %vm1549_vm3, %v1539_v60, 0  ;;  %2936 = vmatpush3.bf16.xpose.msra.mxu0 %v1554_v62 }
 0x136   : > { %2942 = vmatpush3.bf16.xpose.msra.mxu1 %v1600_v63  ;;  %2947 = vmatprep.subr.bf16.mxu0 %v3264_v2 }
 0x137   : > { %v1264_v7 = vpop.f32.mrb[12].mxu0  ;;  %2953 = vmatprep.subr.bf16.mxu1 %v3264_v2 }
 0x138   : > { %v1265_v9 = vadd.f32 %v2688_v0, %v1264_v7  ;;  %v1316_v10 = vpop.f32.mrb[12].mxu1  ;;  %v2893_v11 = vpop.f32.mrb[13].mxu0 }
 0x139   : > { %v1317_v12 = vadd.f32 %v2689_v3, %v1316_v10  ;;  %v1267_v13 = vpop.f32.mrb[14].mxu0  ;;  %v2901_v14 = vpop.f32.mrb[13].mxu1 }
 0x13a   : > { %v1540_v17 = vpack.c.bf16 %v1265_v9, %v1265_v9  ;;  %v2894_v18 = vpop.f32.mrb[15].mxu0  ;;  %v1319_v19 = vpop.f32.mrb[14].mxu1 }
 0x13b   : > { %v1541_v22 = vpack.c.bf16 %v1317_v12, %v1317_v12  ;;  %v2902_v23 = vpop.f32.mrb[15].mxu1 }
 0x13c   : > { %v1646_v24 = vsel %vm1549_vm3, %v1540_v17, 0  ;;  %2938 = vmatmul.mubr.msk.bf16.vlgmr.msra.gmra.mrb[24].mxu0 %vm1549_vm3, %v1534_v15 }
 0x13d   : > { %v1692_v25 = vsel %vm1549_vm3, %v1541_v22, 0  ;;  %2944 = vmatmul.mubr.msk.bf16.vlgmr.msra.gmra.mrb[24].mxu1 %vm1549_vm3, %v1535_v20  ;;  %2948 = vmatpush3.bf16.xpose.msra.mxu0 %v1646_v24 }
 0x13e   : > { %2954 = vmatpush3.bf16.xpose.msra.mxu1 %v1692_v25  ;;  %2949 = vmatprep.mubr.msk.bf16.mxu0 %vm3265_vm1, %v3264_v2 }
 0x13f   : > { %2955 = vmatprep.mubr.msk.bf16.mxu1 %vm3265_vm1, %v3264_v2  ;;  %2959 = vmatprep.subr.bf16.mxu0 %v3264_v2  ;;  %v1368_v31 = vpop.f32.mrb[16].mxu0 }
 0x140   : > { %2965 = vmatprep.subr.bf16.mxu1 %v3264_v2  ;;  %v1369_v33 = vadd.f32 %v2690_v30, %v1368_v31  ;;  %v2909_v34 = vpop.f32.mrb[17].mxu0 }
 0x141   : > { %v1371_v35 = vpop.f32.mrb[18].mxu0  ;;  %v1420_v36 = vpop.f32.mrb[16].mxu1 }
 0x142   : > { %v1782_v37 = vpack.c.bf16 %v1369_v33, %v1369_v33  ;;  %v2910_v38 = vpop.f32.mrb[19].mxu0  ;;  %v1421_v39 = vadd.f32 %v2691_v32, %v1420_v36  ;;  %v2917_v40 = vpop.f32.mrb[17].mxu1 }
 0x143   : > { %v1423_v41 = vpop.f32.mrb[18].mxu1 }
 0x144   : > { %2950 = vmatmul.mubr.msk.bf16.vlgmr.msra.gmra.mrb[28].mxu0 %vm1549_vm3, %v1536_v28  ;;  %v1791_v42 = vsel %vm1789_vm4, %v1782_v37, 0  ;;  %v1783_v43 = vpack.c.bf16 %v1421_v39, %v1421_v39  ;;  %v2918_v44 = vpop.f32.mrb[19].mxu1  ;;  %v2692_v39 = vld [vmem:[%s3456_s27 + $0xa] ss:$0 sm:$0xff] }
 0x145   : > { %2956 = vmatmul.mubr.msk.bf16.vlgmr.msra.gmra.mrb[28].mxu1 %vm1549_vm3, %v1537_v29  ;;  %2961 = vmatprep.mubr.msk.bf16.mxu0 %vm3265_vm1, %v3264_v2 }
 0x146   : > { %2967 = vmatprep.mubr.msk.bf16.mxu1 %vm3265_vm1, %v3264_v2  ;;  %2960 = vmatpush3.bf16.msra.mxu0 %v1791_v42  ;;  %v1837_v45 = vsel %vm1789_vm4, %v1783_v43, 0  ;;  %v2693_v42 = vld [vmem:[%s3456_s27 + $0xb] ss:$0 sm:$0xff] }
 0x147   : > { %2971 = vmatprep.subr.bf16.mxu0 %v3264_v2  ;;  %2966 = vmatpush3.bf16.msra.mxu1 %v1837_v45  ;;  %v3644_v46 = vpop.f32.mrb[20].mxu0 }
 0x148   : > { %2977 = vmatprep.subr.bf16.mxu1 %v3264_v2  ;;  %v2925_v48 = vpop.f32.mrb[21].mxu0  ;;  %v1473_v40 = vadd.f32 %v2692_v39, %v3644_v46 }
 0x149   : > { %v3646_v47 = vpop.f32.mrb[20].mxu1  ;;  %v1475_v50 = vpop.f32.mrb[22].mxu0 }
 0x14a   : > { %v2933_v49 = vpop.f32.mrb[21].mxu1  ;;  %v2926_v52 = vpop.f32.mrb[23].mxu0  ;;  %v1784_v44 = vpack.c.bf16 %v1473_v40, %v1473_v40  ;;  %v1525_v45 = vadd.f32 %v2693_v42, %v3646_v47  ;;  %v806_v47 = vld [vmem:[%s3451_s30] sm:$0xf] }
 0x14b   : > { %v1527_v51 = vpop.f32.mrb[22].mxu1 }
 0x14c   : > { %v2934_v53 = vpop.f32.mrb[23].mxu1  ;;  %v1883_v52 = vsel %vm1789_vm4, %v1784_v44, 0 }
 0x14d   : > { %v1785_v53 = vpack.c.bf16 %v1525_v45, %v1525_v45  ;;  %v2743_v45 = vld [vmem:[%s3897_s23] ss:$0 sm:$0xff] }
 0x20f   : > { %v1590_v55 = vpop.f32.mrb[24].mxu0 }
 0x210   : > { %v1591_v56 = vadd.f32 %v2730_v54, %v1590_v55  ;;  %v1636_v57 = vpop.f32.mrb[24].mxu1  ;;  %v2939_v58 = vpop.f32.mrb[25].mxu0 }
 0x211   : > { %v2945_v59 = vpop.f32.mrb[25].mxu1  ;;  %v1593_v60 = vpop.f32.mrb[26].mxu0  ;;  %v1637_v61 = vadd.f32 %v2730_v54, %v1636_v57 }
 0x212   : > { %v1639_v62 = vpop.f32.mrb[26].mxu1  ;;  %v2940_v63 = vpop.f32.mrb[27].mxu0  ;;  %v1734_v0 = vsel %vm1549_vm3, %v1591_v56, -inf  ;;  %v1979_v59 = vsel %vm1789_vm4, %v806_v47, 0 }
 0x213   : > { %v2946_v1 = vpop.f32.mrb[27].mxu1  ;;  %1735 = vmax.xlane.f32.xlu0 %v1734_v0  ;;  %v1737_v3 = vsel %vm1549_vm3, %v1637_v61, -inf  ;;  %v807_v63 = vld [vmem:[%s3451_s30 + $0x4] sm:$0xf] }
 0x214   : > { %v2025_v0 = vsel %vm1789_vm4, %v807_v63, 0  ;;  %v808_v1 = vld [vmem:[%s3451_s30 + $0x8] sm:$0xf] }
 0x217   : > { %1738 = vmax.xlane.f32.xlu0 %v1737_v3  ;;  %v1682_v4 = vpop.f32.mrb[28].mxu0 }
 0x218   : > { %v1728_v5 = vpop.f32.mrb[28].mxu1  ;;  %v1683_v7 = vadd.f32 %v2730_v54, %v1682_v4  ;;  %v2951_v8 = vpop.f32.mrb[29].mxu0 }
 0x219   : > { %v2957_v9 = vpop.f32.mrb[29].mxu1  ;;  %v1685_v10 = vpop.f32.mrb[30].mxu0  ;;  %v1729_v11 = vadd.f32 %v2730_v54, %v1728_v5 }
 0x21a   : > { %v1731_v12 = vpop.f32.mrb[30].mxu1  ;;  %v2952_v13 = vpop.f32.mrb[31].mxu0  ;;  %v1740_v14 = vsel %vm1549_vm3, %v1683_v7, -inf  ;;  %v809_v9 = vld [vmem:[%s3451_s30 + $0xc] sm:$0xf]  ;;  %s3902_s30 = sld [smem:[#allocation8_spill]] }
 0x21b   : > { %v2958_v15 = vpop.f32.mrb[31].mxu1  ;;  %1741 = vmax.xlane.f32.xlu1 %v1740_v14  ;;  %v1743_v16 = vsel %vm1549_vm3, %v1729_v11, -inf  ;;  %v2117_v14 = vsel %vm1789_vm4, %v809_v9, 0 }
 0x21f   : > { %1744 = vmax.xlane.f32.xlu1 %v1743_v16 }
 0x220   : > { %p2758_p1 = scmp.ne.s32.totalorder %s3902_s30, 1 }
 0x221   : > { %vm3267_vm6 = vmmov (!%p2758_p1), 0   ;;  %vm2443_vm7 = vcmask (!%p2758_p1), 1040384  }
 0x2a0   : > { %v1736_v17 = vpop.xlane.xlu0 %1735 }
 0x2a1   : > { %v1746_v18 = vsub.f32 %v1591_v56, %v1736_v17  ;;  %v1929_v56 = vsel %vm1789_vm4, %v1785_v53, 0 }
 0x2a3   : > { %v1750_v19 = vmul.f32 1.442695, %v1746_v18 }
 0x2a4   : > { %v1739_v20 = vpop.xlane.xlu0 %1738 }
 0x2a5   : > { %3142 = vpow2.f32 %v1750_v19  ;;  %v1747_v21 = vsub.f32 %v1637_v61, %v1739_v20 }
 0x2a7   : > { %v1752_v22 = vmul.f32 1.442695, %v1747_v21 }
 0x2a8   : > { %v1742_v23 = vpop.xlane.xlu1 %1741 }
 0x2a9   : > { %3144 = vpow2.f32 %v1752_v22  ;;  %v1748_v24 = vsub.f32 %v1683_v7, %v1742_v23  ;;  %v2071_v7 = vsel %vm1789_vm4, %v808_v1, 0 }
 0x2ab   : > { %v1754_v25 = vmul.f32 1.442695, %v1748_v24 }
 0x2ac   : > { %v1745_v26 = vpop.xlane.xlu1 %1744 }
 0x2ad   : > { %3146 = vpow2.f32 %v1754_v25  ;;  %v1749_v27 = vsub.f32 %v1729_v11, %v1745_v26 }
 0x2af   : > { %v3143_v28 = vpop.eup %3142  ;;  %v1756_v29 = vmul.f32 1.442695, %v1749_v27 }
 0x2b0   : > { %v1758_v30 = vsel %vm1549_vm3, %v3143_v28, 0.0 }
 0x2b1   : > { %3148 = vpow2.f32 %v1756_v29  ;;  %1759 = vadd.xlane.f32.xlu0 %v1758_v30 }
 0x2b3   : > { %v3145_v31 = vpop.eup %3144 }
 0x2b4   : > { %v1761_v32 = vsel %vm1549_vm3, %v3145_v31, 0.0 }
 0x2b5   : > { %1762 = vadd.xlane.f32.xlu1 %v1761_v32 }
 0x2b7   : > { %v3147_v33 = vpop.eup %3146 }
 0x2b8   : > { %v1764_v34 = vsel %vm1549_vm3, %v3147_v33, 0.0 }
 0x2b9   : > { %1765 = vadd.xlane.f32.xlu0 %v1764_v34 }
 0x2bb   : > { %v3149_v35 = vpop.eup %3148 }
 0x2bc   : > { %v1767_v36 = vsel %vm1549_vm3, %v3149_v35, 0.0 }
 0x2bd   : > { %1768 = vadd.xlane.f32.xlu1 %v1767_v36 }
 0x33e   : > { %v1760_v37 = vpop.xlane.xlu0 %1759 }
 0x33f   : > { %3150 = vrcp.f32 %v1760_v37 }
 0x342   : > { %v1763_v38 = vpop.xlane.xlu1 %1762 }
 0x343   : > { %3152 = vrcp.f32 %v1763_v38 }
 0x346   : > { %v1766_v41 = vpop.xlane.xlu0 %1765 }
 0x347   : > { %3154 = vrcp.f32 %v1766_v41 }
 0x349   : > { %v3151_v43 = vpop.eup %3150 }
 0x34a   : > { %v1774_v48 = vmul.f32 %v3151_v43, %v3143_v28  ;;  %v1769_v49 = vpop.xlane.xlu1 %1768 }
 0x34b   : > { %3156 = vrcp.f32 %v1769_v49 }
 0x34c   : > { %v1778_v50 = vpack.c.bf16 %v1774_v48, %v1774_v48 }
 0x34d   : > { %v3153_v51 = vpop.eup %3152 }
 0x34e   : > { %v1775_v54 = vmul.f32 %v3153_v51, %v3145_v31  ;;  %2962 = vmatmul.mubr.msk.bf16.vlgmr.msra.gmra.mrb[32].mxu0 %vm1549_vm3, %v1778_v50 }
 0x34f   : > { %2972 = vmatpush3.bf16.msra.mxu0 %v1883_v52  ;;  %2973 = vmatprep.mubr.msk.bf16.mxu0 %vm3265_vm1, %v3264_v2 }
 0x350   : > { %v1779_v46 = vpack.c.bf16 %v1775_v54, %v1775_v54  ;;  %2983 = vmatprep.subr.bf16.mxu0 %v3264_v2 }
 0x351   : > { %v3155_v55 = vpop.eup %3154 }
 0x352   : > { %v1776_v57 = vmul.f32 %v3155_v55, %v3147_v33  ;;  %2968 = vmatmul.mubr.msk.bf16.vlgmr.msra.gmra.mrb[32].mxu1 %vm1549_vm3, %v1779_v46 }
 0x353   : > { %2978 = vmatpush3.bf16.msra.mxu1 %v1929_v56  ;;  %2979 = vmatprep.mubr.msk.bf16.mxu1 %vm3265_vm1, %v3264_v2 }
 0x354   : > { %v1780_v58 = vpack.c.bf16 %v1776_v57, %v1776_v57  ;;  %2989 = vmatprep.subr.bf16.mxu1 %v3264_v2 }
 0x355   : > { %v3157_v60 = vpop.eup %3156 }
 0x356   : > { %v1777_v61 = vmul.f32 %v3157_v60, %v3149_v35  ;;  %2974 = vmatmul.mubr.msk.bf16.vlgmr.msra.gmra.mrb[36].mxu0 %vm1549_vm3, %v1780_v58  ;;  %v3137_v60 = vld [vmem:[%s3473_s4 + $0x8] sm:$0xff]  }
 0x357   : > { %2984 = vmatpush3.bf16.msra.mxu0 %v1979_v59  ;;  %2985 = vmatprep.mubr.msk.bf16.mxu0 %vm3265_vm1, %v3264_v2  ;;  %v3136_v59 = vld [vmem:[%s3473_s4] sm:$0xff]   ;;  %s3903_s4 = sld [smem:[#allocation26_spill]] (!%p2758_p1) }
 0x358   : > { %v1781_v62 = vpack.c.bf16 %v1777_v61, %v1777_v61  ;;  %2995 = vmatprep.subr.bf16.mxu0 %v3264_v2  ;;  %v3139_v61 = vld [vmem:[%s3487_s15 + $0x8] sm:$0xff]  }
 0x35a   : > { %2980 = vmatmul.mubr.msk.bf16.vlgmr.msra.gmra.mrb[36].mxu1 %vm1549_vm3, %v1781_v62 }
 0x35b   : > { %2991 = vmatprep.mubr.msk.bf16.mxu1 %vm3265_vm1, %v3264_v2  ;;  %2990 = vmatpush3.bf16.msra.mxu1 %v2025_v0 }
 0x35c   : > { %3001 = vmatprep.subr.bf16.mxu1 %v3264_v2 }
 0x421   : > { %v1827_v3 = vpop.f32.mrb[32].mxu0 }
 0x422   : > { %v1971_v4 = vpack.c.bf16 %v1827_v3, %v1827_v3  ;;  %v2963_v5 = vpop.f32.mrb[33].mxu0  ;;  %v2744_v3 = vld [vmem:[%s3898_s1] ss:$0 sm:$0xff]  ;;  %s3904_s1 = sld [smem:[#allocation27_spill]] (!%p2758_p1) }
 0x423   : > { %v1830_v8 = vpop.f32.mrb[34].mxu0  ;;  %v2745_v5 = vld [vmem:[%s3899_s28] ss:$0 sm:$0xff] }
 0x424   : > { %v2964_v10 = vpop.f32.mrb[35].mxu0  ;;  %2986 = vmatmul.mubr.msk.bf16.vlgmr.msra.gmra.mrb[40].mxu0 %vm1549_vm3, %v1971_v4 }
 0x425   : > { %v1873_v11 = vpop.f32.mrb[32].mxu1  ;;  %2996 = vmatpush3.bf16.msra.mxu0 %v2071_v7  ;;  %2997 = vmatprep.mubr.msk.bf16.mxu0 %vm3265_vm1, %v3264_v2  ;;  %v3140_v10 = vld [vmem:[%s3487_s15 + $0x10] sm:$0xff]  }
 0x426   : > { %v1972_v12 = vpack.c.bf16 %v1873_v11, %v1873_v11  ;;  %v2969_v13 = vpop.f32.mrb[33].mxu1  ;;  %3007 = vmatprep.subr.bf16.mxu0 %v3264_v2  ;;  %v3141_v11 = vld [vmem:[%s3487_s15 + $0x18] sm:$0xff]  }
 0x427   : > { %v1876_v15 = vpop.f32.mrb[34].mxu1 }
 0x428   : > { %v2970_v16 = vpop.f32.mrb[35].mxu1  ;;  %2992 = vmatmul.mubr.msk.bf16.vlgmr.msra.gmra.mrb[40].mxu1 %vm1549_vm3, %v1972_v12  ;;  %v2746_v12 = vld [vmem:[%s3900_s17] ss:$0 sm:$0xff] }
 0x429   : > { %v1919_v17 = vpop.f32.mrb[36].mxu0  ;;  %3002 = vmatpush3.bf16.msra.mxu1 %v2117_v14  ;;  %3003 = vmatprep.mubr.msk.bf16.mxu1 %vm3265_vm1, %v3264_v2 }
 0x42a   : > { %v1973_v18 = vpack.c.bf16 %v1919_v17, %v1919_v17  ;;  %v2975_v19 = vpop.f32.mrb[37].mxu0  ;;  %3015 = vmatprep.subr.bf16.mxu1 %v3264_v2 }
 0x42b   : > { %v1922_v20 = vpop.f32.mrb[38].mxu0 }
 0x42c   : > { %v2976_v21 = vpop.f32.mrb[39].mxu0  ;;  %2998 = vmatmul.mubr.msk.bf16.vlgmr.msra.gmra.mrb[44].mxu0 %vm1549_vm3, %v1973_v18 }
 0x42d   : > { %v1965_v22 = vpop.f32.mrb[36].mxu1  ;;  %3011 = vmatprep.mubr.msk.bf16.mxu0 %vm3265_vm1, %v3264_v2  ;;  %3008 = vmatpush3.bf16.msra.mxu0 %v3136_v59 }
 0x42e   : > { %v1974_v23 = vpack.c.bf16 %v1965_v22, %v1965_v22  ;;  %v2981_v24 = vpop.f32.mrb[37].mxu1  ;;  %3009 = vmatprep.subr.bf16.mxu0 %v3264_v2 }
 0x42f   : > { %v1968_v25 = vpop.f32.mrb[38].mxu1 }
 0x430   : > { %v2982_v26 = vpop.f32.mrb[39].mxu1  ;;  %3004 = vmatmul.mubr.msk.bf16.vlgmr.msra.gmra.mrb[44].mxu1 %vm1549_vm3, %v1974_v23 }
 0x431   : > { %3023 = vmatprep.mubr.msk.bf16.mxu1 %vm3265_vm1, %v3264_v2  ;;  %3010 = vmatpush3.bf16.msra.mxu0 %v3137_v60 }
 0x4f7   : > { %v2015_v27 = vpop.f32.mrb[40].mxu0 }
 0x4f8   : > { %v2987_v28 = vpop.f32.mrb[41].mxu0  ;;  %v2159_v32 = vsel %vm914_vm2, %v2015_v27, 0.0 }
 0x4f9   : > { %v2018_v29 = vpop.f32.mrb[42].mxu0 }
 0x4fa   : > { %v2988_v30 = vpop.f32.mrb[43].mxu0 }
 0x4fb   : > { %v2061_v31 = vpop.f32.mrb[40].mxu1 }
 0x4fc   : > { %v2160_v33 = vsel %vm914_vm2, %v2061_v31, 0.0  ;;  %v2993_v34 = vpop.f32.mrb[41].mxu1 }
 0x4fd   : > { %v2161_v35 = vadd.f32 %v2160_v33, %v2159_v32  ;;  %v2064_v36 = vpop.f32.mrb[42].mxu1 }
 0x4fe   : > { %v2994_v37 = vpop.f32.mrb[43].mxu1  ;;  %v2756_v36 = vld [vmem:[%s733_s13] ss:$0 sm:$0xff] }
 0x4ff   : > { %v2107_v38 = vpop.f32.mrb[44].mxu0 }
 0x500   : > { %v2162_v39 = vsel %vm914_vm2, %v2107_v38, 0.0  ;;  %v2999_v40 = vpop.f32.mrb[45].mxu0  ;;  %v2757_v38 = vld [vmem:[%s736_s8] ss:$0 sm:$0xff] }
 0x501   : > { %v2163_v41 = vadd.f32 %v2162_v39, %v2161_v35  ;;  %v2110_v42 = vpop.f32.mrb[46].mxu0 }
 0x502   : > { %v3000_v43 = vpop.f32.mrb[47].mxu0  ;;  %v3266_v42 = vmov (!%p2758_p1), 0.0  }
 0x503   : > { %v2153_v44 = vpop.f32.mrb[44].mxu1  ;;  %3027 = vmatprep.subr.bf16.mxu0 (!%p2758_p1), %v3266_v42  ;;  %v3163_v43 = vld [vmem:[%s3903_s4 + $0x8] sm:$0xff] (!%p2758_p1)  }
 0x504   : > { %v2164_v48 = vsel %vm914_vm2, %v2153_v44, 0.0  ;;  %v3005_v49 = vpop.f32.mrb[45].mxu1 }
 0x505   : > { %v2165_v50 = vadd.f32 %v2164_v48, %v2163_v41  ;;  %v2156_v51 = vpop.f32.mrb[46].mxu1  ;;  %v3162_v41 = vld [vmem:[%s3903_s4] sm:$0xff] (!%p2758_p1)  }
 0x506   : > { %v3006_v52 = vpop.f32.mrb[47].mxu1 }
 0x507   : > { %v2172_v53 = vadd.f32 %v2743_v45, %v2165_v50 }
 0x509   : > { %v2173_v54 = vadd.f32 %v2172_v53, %v3514_v6  ;;  %v3138_v6 = vld [vmem:[%s3487_s15] sm:$0xff]  }
 0x50a   : > { %3016 = vmatpush3.bf16.msra.mxu1 %v3138_v6 }
 0x50b   : > { %v2174_v46 = vsel %vm914_vm2, %v2173_v54, 0.0  ;;  %3017 = vmatprep.subr.bf16.mxu1 %v3264_v2 }
 0x50c   : > { %2175 = vadd.xlane.f32.xlu0 %v2174_v46  ;;  %v2387_v46 = vld [vmem:[%s3904_s1] sm:$0x1] (!%p2758_p1) }
 0x50e   : > { %3018 = vmatpush3.bf16.msra.mxu1 %v3139_v61 }
 0x50f   : > { %3019 = vmatprep.subr.bf16.mxu1 %v3264_v2 }
 0x512   : > { %3020 = vmatpush3.bf16.msra.mxu1 %v3140_v10 }
 0x513   : > { %3021 = vmatprep.subr.bf16.mxu1 %v3264_v2  ;;  %v2750_v2 = vld [vmem:[%s730_s20] ss:$0 sm:$0xff] }
 0x516   : > { %3022 = vmatpush3.bf16.msra.mxu1 %v3141_v11 }
 0x599   : > { %v2176_v55 = vpop.xlane.xlu0 %2175 }
 0x59a   : > { %v2178_v47 = vmul.f32 0.03125, %v2176_v55 }
 0x59c   : > { %v2179_v56 = vsub.f32 %v2173_v54, %v2178_v47 }
 0x59e   : > { %v2180_v57 = vmul.f32 %v2179_v56, %v2179_v56 }
 0x5a0   : > { %v2181_v58 = vsel %vm914_vm2, %v2180_v57, 0.0 }
 0x5a1   : > { %2182 = vadd.xlane.f32.xlu1 %v2181_v58 }
 0x62e   : > { %v2183_v62 = vpop.xlane.xlu1 %2182 }
 0x62f   : > { %v2184_v63 = vmul.f32 0.03125, %v2183_v62 }
 0x631   : > { %v2185_v0 = vadd.f32 1e-05, %v2184_v63 }
 0x633   : > { %3158 = vrsqrt.f32 %v2185_v0 }
 0x63d   : > { %v3159_v1 = vpop.eup %3158 }
 0x63e   : > { %v2187_v4 = vmul.f32 %v3159_v1, %v2179_v56 }
 0x640   : > { %v2194_v7 = vmul.f32 %v2744_v3, %v2187_v4 }
 0x642   : > { %v2201_v8 = vadd.f32 %v2745_v5, %v2194_v7 }
 0x644   : > { %v2202_v9 = vpack.c.bf16 %v2201_v8, %v2201_v8 }
 0x646   : > { %3012 = vmatmul.mubr.msk.bf16.vlgmr.msra.gmra.mrb[48].mxu0 %vm914_vm2, %v2202_v9 }
 0x647   : > { %3028 = vmatpush3.bf16.msra.mxu0 (!%p2758_p1), %v3162_v41  ;;  %3031 = vmatprep.mubr.msk.bf16.mxu0 (!%p2758_p1), %vm3267_vm6, %v3266_v42 }
 0x648   : > { %3029 = vmatprep.subr.bf16.mxu0 (!%p2758_p1), %v3266_v42 }
 0x64b   : > { %3030 = vmatpush3.bf16.msra.mxu0 (!%p2758_p1), %v3163_v43 }
 0x719   : > { %v2258_v13 = vpop.f32.mrb[48].mxu0 }
 0x71a   : > { %v2259_v14 = vadd.f32 %v2746_v12, %v2258_v13  ;;  %v3013_v15 = vpop.f32.mrb[49].mxu0 }
 0x71b   : > { %v2261_v16 = vpop.f32.mrb[50].mxu0 }
 0x71c   : > { %v2264_v17 = vmax.f32 %v2259_v14, 0.0  ;;  %v3014_v18 = vpop.f32.mrb[51].mxu0 }
 0x71e   : > { %v2265_v19 = vpack.c.bf16 %v2264_v17, %v2264_v17 }
 0x720   : > { %3024 = vmatmul.mubr.msk.bf16.vlgmr.msra.gmra.mrb[48].mxu1 %vm2296_vm5, %v2265_v19 }
 0x7f3   : > { %v2334_v20 = vpop.f32.mrb[48].mxu1 }
 0x7f4   : > { %v2335_v21 = vadd.f32 %v2750_v2, %v2334_v20  ;;  %v3025_v22 = vpop.f32.mrb[49].mxu1 }
 0x7f5   : > { %v2337_v23 = vpop.f32.mrb[50].mxu1 }
 0x7f6   : > { %v3026_v24 = vpop.f32.mrb[51].mxu1  ;;  %v2340_v25 = vadd.f32 %v2335_v21, %v2201_v8 }
 0x7f8   : > { %v2341_v26 = vsel %vm914_vm2, %v2340_v25, 0.0 }
 0x7f9   : > { %2342 = vadd.xlane.f32.xlu0 %v2341_v26 }
 0x886   : > { %v2343_v27 = vpop.xlane.xlu0 %2342 }
 0x887   : > { %v2344_v28 = vmul.f32 0.03125, %v2343_v27 }
 0x889   : > { %v2345_v29 = vsub.f32 %v2340_v25, %v2344_v28 }
 0x88b   : > { %v2346_v30 = vmul.f32 %v2345_v29, %v2345_v29 }
 0x88d   : > { %v2347_v31 = vsel %vm914_vm2, %v2346_v30, 0.0 }
 0x88e   : > { %2348 = vadd.xlane.f32.xlu1 %v2347_v31 }
 0x91b   : > { %v2349_v32 = vpop.xlane.xlu1 %2348 }
 0x91c   : > { %v2350_v33 = vmul.f32 0.03125, %v2349_v32 }
 0x91e   : > { %v2351_v34 = vadd.f32 1e-05, %v2350_v33 }
 0x920   : > { %3160 = vrsqrt.f32 %v2351_v34 }
 0x92a   : > { %v3161_v35 = vpop.eup %3160 }
 0x92b   : > { %v2353_v37 = vmul.f32 %v3161_v35, %v2345_v29  ;;  %2372 = sbr.rel (%p2758_p1) target bundleno = 2901 (0xb55), region = 92 }
 0x92d   : > { %v2360_v39 = vmul.f32 %v2756_v36, %v2353_v37 }
 0x92f   : > { %v2367_v40 = vadd.f32 %v2757_v38, %v2360_v39 }
 0x931   : > { %2368 = vst.msk [vmem:[#allocation2] sm:$0xff] %vm914_vm2, %v2367_v40  ;;  %v2373_v44 = vsel (!%p2758_p1), %vm914_vm2, %v2367_v40, 0.0 }
 0x932   : > { %v2374_v45 = vrot.slane %v2373_v44, 4 }
 0x934   : > { %v2375_v48 = vadd.f32 %v2374_v45, %v2373_v44 }
 0x936   : > { %v2376_v49 = vrot.slane %v2375_v48, 2 }
 0x938   : > { %v2377_v50 = vadd.f32 %v2376_v49, %v2375_v48 }
 0x93a   : > { %v2378_v51 = vrot.slane %v2377_v50, 1 }
 0x93c   : > { %v2379_v52 = vadd.f32 %v2378_v51, %v2377_v50 }
 0x93e   : > { %v2381_v53 = vmul.f32 0.125, %v2379_v52 }
 0x940   : > { %v2382_v54 = vpack.c.bf16 %v2381_v53, %v2381_v53 }
 0x942   : > { %3032 = vmatmul.mubr.msk.bf16.vlgmr.msra.gmra.mrb[0].mxu0 %vm914_vm2, %v2382_v54 }
 0xa15   : > { %v2437_v55 = vpop.f32.mrb[0].mxu0 }
 0xa16   : > { %v2438_v47 = vadd.f32 %v2437_v55, %v2387_v46  ;;  %v3033_v56 = vpop.f32.mrb[1].mxu0 }
 0xa17   : > { %v2440_v57 = vpop.f32.mrb[2].mxu0 }
 0xa18   : > { %v3034_v58 = vpop.f32.mrb[3].mxu0  ;;  %v2444_v59 = vsel %vm2443_vm7, %v2438_v47, -inf }
 0xa19   : > { %2445 = vmax.xlane.f32.xlu0 %v2444_v59 }
 0xaa6   : > { %v2446_v60 = vpop.xlane.xlu0 %2445 }
 0xaa7   : > { %v2447_v6 = vsub.f32 %v2438_v47, %v2446_v60 }
 0xaa9   : > { %v2448_v61 = vmul.f32 1.442695, %v2447_v6 }
 0xaab   : > { %3164 = vpow2.f32 %v2448_v61 }
 0xab5   : > { %v3165_v62 = vpop.eup %3164 }
 0xab6   : > { %v2450_v63 = vsel %vm2443_vm7, %v3165_v62, 0.0 }
 0xab7   : > { %2451 = vadd.xlane.f32.xlu0 %v2450_v63 }
 0xb44   : > { %v2452_v0 = vpop.xlane.xlu0 %2451 }
 0xb45   : > { %3166 = vlog2.f32 %v2452_v0 }
 0xb4f   : > { %v3167_v1 = vpop.eup %3166 }
 0xb50   : > { %v2454_v3 = vmul.f32 0.6931472, %v3167_v1 }
 0xb52   : > { %v2455_v4 = vsub.f32 %v2447_v6, %v2454_v3 }
 0xb54   : > { %2456 = vst [vmem:[%s3499_s16] sm:$0x1] %v2455_v4 }
 0xb55 PF: > { %s3905_s26 = sld [smem:[#allocation9_spill]]  ;;  %s3907_s17 = sld [smem:[#allocation28_spill]] }
 0xb56   : > { %s2470_s3 = sshll.u32 %s3499_s16, 4  ;;  %s3908_s20 = sand.u32 1, %s3238_s22   ;;  %s2471_s3 = int_to_ptr.vmem [resolvable:$true] %s2470_s3 }
 0xb57   : > { %s2458_s15 = scalar_lea.sflag [#allocation4], %s3908_s20  ;;  %s3168_s14 = scalar_lea.vmem %s2471_s3, 16 }
 0xb58   : > { %p3169_p2 = scmp.ne.s32.totalorder %s2471_s3, %s3168_s14  ;;  %s3268_s21 = smov [#allocation3]  }
 0xb59   : > { %s3172_s29 = sshll.u32 %s3268_s21, 4  ;;  %s3173_s29 = int_to_ptr.vmem [resolvable:$false] %s3172_s29 }
 0xb5a   : > { %p3170_p4 = pnand %p3169_p2, %p3403_p3  ;;  %s3174_s30 = scalar_lea.vmem %s3173_s29, 32 }
 0xb5b   : > { %s2762_s28 = sshll.u32 %s3905_s26, 4  ;;  %p3175_p6 = scmp.lt.s32.totalorder %s2471_s3, %s3173_s29 }
 0xb5c   : > { %s3778_s2 = scalar_lea.hbm %s3907_s17, %s2762_s28  ;;  %p3171_p5 = pneg %p3170_p4 }
 0xb5d   : > { %p3176_p7 = scmp.lt.s32.totalorder %s3174_s30, %s3168_s14 }
 0xb5f   : > { %p3177_p8 = por %p3176_p7, %p3175_p6 }
 0xb61   : > { %p3178_p10 = pnand %p3177_p8, %p3171_p5 }
 0xb63   : > { %3181 = shalt.err (!%p3178_p10)
}
 0xb64   : > { %s3182_s16 = scalar_lea.hbm %s3778_s2, 16  ;;  %s3186_s13 = scalar_lea.hbm %s3907_s17, 32 }
 0xb65   : > { %p3183_p11 = scmp.ne.s32.totalorder %s3778_s2, %s3182_s16  ;;  %p3187_p0 = scmp.lt.u32.totalorder %s3778_s2, %s3907_s17 }
 0xb66   : > { %p3188_p1 = scmp.lt.u32.totalorder %s3186_s13, %s3182_s16  ;;  %p3190_p4 = scmp.lt.u32.totalorder %s3182_s16, %s3778_s2 }
 0xb67   : > { %p3184_p12 = pnand %p3183_p11, %p3403_p3 }
 0xb68   : > { %p3189_p2 = por %p3188_p1, %p3187_p0 }
 0xb69   : > { %p3185_p13 = pneg %p3184_p12 }
 0xb6a   : > { %p3191_p5 = por %p3190_p4, %p3189_p2 }
 0xb6c   : > { %p3192_p6 = pnand %p3191_p5, %p3185_p13 }
 0xb6e   : > { %3195 = shalt.err (!%p3192_p6)
}
 0xb6f   : > { %3037 = dma.vmem_to_hbm [thread:$0]  (%p3403_p3), %s2471_s3, 16, %s3778_s2, %s2458_s15  }
 0xb70 PF: > { %s3909_s19 = sld [smem:[#allocation12_spill]]  ;;  %s3910_s1 = sld [smem:[#allocation6_spill]] }
 0xb76   : > { %p3043_p7 = scmp.ge.s32.totalorder %s3909_s19, 2  ;;  %s2482_s28 = sand.u32 1, %s3910_s1  }
 0xb77   : > { %s2483_s18 = scalar_lea.sflag [#allocation4], %s2482_s28 }
 0xb78   : > { %p3040_p8 = pnand %p3043_p7, %p3413_p9 }
 0xb7a   : > { %3229 = dma.done.wait (!%p3040_p8), %s2483_s18, 16  }
 0xb7b   : > { %3231 = vsyncadd (!%p3040_p8), %s2483_s18, 4294967280  ;;  %s29_s28 = sadd.s32 1, %s3909_s19   ;;  %s3912_s24 = sld [smem:[#allocation7_spill]] }
 0xb7c   : > { %p26_p10 = scmp.ge.s32.totalorder %s29_s28, 6   ;;  %s3913_s23 = sld [smem:[#allocation17_spill]] }
 0xb7d   : > { %s3914_s25 = sld [smem:[#allocation10_spill]]  ;;  %s3915_s20 = sld [smem:[#allocation11_spill]] }
 0xb7e   : > { %s3916_s26 = sld [smem:[#allocation13_spill]]  ;;  %s3917_s27 = sld [smem:[#allocation15_spill]] }
 0xb7f   : > { %s3918_s21 = smov %s3238_s22  ;;  %28 = sbr.rel (!%p26_p10) target bundleno = 16 (0x10), region = 166 }
 0xb81   : > { %s3919_s22 = smov %s3912_s24 }
 0xb83   : > { %s3920_s24 = smov %s3914_s25  ;;  %s3921_s25 = smov %s3915_s20 }
 0xb86   :  { %2487 = vsyncpa [#allocation4], 1 }
 0xb87   :  { %2489 = vsyncpa [#allocation4 + $0x1], 1 }

</bundles_post_ra>
